<compile_context>
chip_gen: v7x
topology: tpu7x:2x2x1
jax: 0.10.0
libtpu: 0.0.40
codegen_flags: <defaults>
</compile_context>

<pallas_src>
import jax
import jax.numpy as jnp
from jax.experimental import pallas as pl
from jax.experimental.pallas import tpu as pltpu


def _round_up(a, b):
    return (a + b - 1) // b * b


def _vmem_capacity_bytes():
    try:
        return int(pltpu.get_tpu_info().vmem_capacity_bytes)
    except Exception:
        return 64 * 1024 * 1024  # conservative default (v7x per-TensorCore)


def ffn_kernel(x_ref, w1_ref, b1_ref, w2_ref, b2_ref, o_ref):
    h_idx = pl.program_id(1)
    last_h = pl.num_programs(1) - 1

    # Cast activations to bf16 on the VPU (x read from HBM once as f32; no
    # wrapper-side cast copy through HBM).
    xb = x_ref[...].astype(jnp.bfloat16)

    # First linear for this hidden block: (tm, D) @ (D, th) -> f32 on the MXU.
    h = jnp.dot(xb, w1_ref[...], preferred_element_type=jnp.float32)
    h = jnp.maximum(h + b1_ref[...], 0.0)          # bias + ReLU in f32 (VPU)

    # Partial second linear: (tm, th) @ (th, D), accumulated in f32 directly
    # in the VMEM-resident output block.
    part = jnp.dot(h.astype(jnp.bfloat16), w2_ref[...],
                   preferred_element_type=jnp.float32)

    @pl.when(h_idx == 0)
    def _():
        o_ref[...] = part            # write-on-first-step (no zero-init pass)

    @pl.when(h_idx != 0)
    def _():
        o_ref[...] += part

    @pl.when(h_idx == last_h)
    def _():
        o_ref[...] += b2_ref[...]
        # Dropout: identity (eval mode).
        # TODO(synk): fused train-mode dropout with pltpu PRNG here.


def prepare_ffn_params(w1, b1, w2, b2, *, requested_th=512):
    """One-time weight prep: bf16 MXU operands, hidden dim padded to the tile.

    Call once and cache the result (e.g. at model init) -- re-casting weights
    on every forward call wastes HBM bandwidth.
    """
    D, H = w1.shape
    weight_budget = _vmem_capacity_bytes() // 4   # ~16 MiB v7x, ~32 MiB v5e/v6e

    Hp = _round_up(H, 128)
    if 4 * D * Hp <= weight_budget:
        # Full bf16 W1 + W2 fit comfortably: collapse the reduction to 1 step.
        th = Hp
    else:
        th = max(128, (min(requested_th, Hp) // 128) * 128)
        # Keep double-buffered per-step weight blocks within budget.
        while th > 128 and 8 * D * th > weight_budget:
            th -= 128
        Hp = _round_up(H, th)

    w1b = w1.astype(jnp.bfloat16)
    w2b = w2.astype(jnp.bfloat16)
    b1f = b1.astype(jnp.float32)
    if Hp != H:
        # Zero padding is exact: relu(x @ 0 + 0) = 0 and 0 @ W2 adds nothing.
        w1b = jnp.pad(w1b, ((0, 0), (0, Hp - H)))
        b1f = jnp.pad(b1f, ((0, Hp - H),))
        w2b = jnp.pad(w2b, ((0, Hp - H), (0, 0)))

    return {
        "w1": w1b,
        "b1": b1f.reshape(1, Hp),
        "w2": w2b,
        "b2": b2.astype(jnp.float32).reshape(1, D),
        "th": th,
    }


def feed_forward(x, params, *, tm=256):
    """x: (B, T, D). params: from prepare_ffn_params. Returns (B, T, D)."""
    B, T, D = x.shape
    w1, b1, w2, b2 = params["w1"], params["b1"], params["w2"], params["b2"]
    th = params["th"]
    Hp = w1.shape[1]
    M = B * T

    # Row tile: multiple of 8; ensure >= 2 M tiles so the "parallel" axis can
    # shard across v7x's two TensorCores (harmless on single-TC v5e/v6e).
    tm = min(tm, _round_up(M, 8))
    if M > 8 and _round_up(M, tm) // tm < 2:
        tm = _round_up((M + 1) // 2, 8)
    Mp = _round_up(M, tm)

    x2d = x.reshape(M, D).astype(jnp.float32)
    if Mp != M:
        x2d = jnp.pad(x2d, ((0, Mp - M), (0, 0)))

    grid = (Mp // tm, Hp // th)

    flops = 2 * Mp * D * Hp * 2
    bytes_accessed = (Mp * D * 4 + w1.size * 2 + w2.size * 2
                      + b1.size * 4 + b2.size * 4 + Mp * D * 4)
    cost = pl.CostEstimate(flops=flops, transcendentals=0,
                           bytes_accessed=bytes_accessed)

    # VMEM sizing: actual footprint + headroom, clamped under physical capacity
    # (leaves room for compiler-internal scratch: 48 MiB cap on v7x, 96 on v6e).
    need = (2 * tm * D * 4            # x blocks (f32, double-buffered)
            + 2 * 4 * D * th          # W1 + W2 blocks (bf16, double-buffered)
            + 2 * (th + D) * 4        # biases
            + 2 * tm * D * 4          # output blocks (f32)
            + tm * th * 6 + tm * D * 2)   # in-kernel temporaries
    cap = _vmem_capacity_bytes()
    vmem_limit = int(min(max(need * 3 // 2, 32 * 1024 * 1024), cap * 3 // 4))

    out2d = pl.pallas_call(
        ffn_kernel,
        out_shape=jax.ShapeDtypeStruct((Mp, D), jnp.float32),
        grid_spec=pltpu.PrefetchScalarGridSpec(
            num_scalar_prefetch=0,
            grid=grid,
            in_specs=[
                pl.BlockSpec((tm, D), lambda i, h: (i, 0)),    # x rows
                pl.BlockSpec((D, th), lambda i, h: (0, h)),    # W1 column block
                pl.BlockSpec((1, th), lambda i, h: (0, h)),    # b1 slice
                pl.BlockSpec((th, D), lambda i, h: (h, 0)),    # W2 row block
                pl.BlockSpec((1, D), lambda i, h: (0, 0)),     # b2
            ],
            out_specs=pl.BlockSpec((tm, D), lambda i, h: (i, 0)),
        ),
        compiler_params=pltpu.CompilerParams(
            dimension_semantics=("parallel", "arbitrary"),
            vmem_limit_bytes=vmem_limit),
        cost_estimate=cost,
    )(x2d, w1, b1, w2, b2)

    return out2d[:M].reshape(B, T, D).astype(x.dtype)


def init_params(key, n_embd):
    """Deterministic init matching nn.Linear shapes (stored as (in, out))."""
    hidden = 4 * n_embd
    k1, k2, k3, k4 = jax.random.split(key, 4)
    bound1 = 1.0 / jnp.sqrt(n_embd)
    bound2 = 1.0 / jnp.sqrt(hidden)
    w1 = jax.random.uniform(k1, (n_embd, hidden), jnp.float32, -bound1, bound1)
    b1 = jax.random.uniform(k2, (hidden,), jnp.float32, -bound1, bound1)
    w2 = jax.random.uniform(k3, (hidden, n_embd), jnp.float32, -bound2, bound2)
    b2 = jax.random.uniform(k4, (n_embd,), jnp.float32, -bound2, bound2)
    return w1, b1, w2, b2


if __name__ == "__main__":
    # Small shapes consistent with the module: (batch, seq, n_embd=384)
    B, T, n_embd = 2, 8, 384          # hidden = 4 * n_embd = 1536
    key = jax.random.PRNGKey(0)
    kx, kp = jax.random.split(key)
    x = jax.random.normal(kx, (B, T, n_embd), jnp.float32)
    w1, b1, w2, b2 = init_params(kp, n_embd)

    params = prepare_ffn_params(w1, b1, w2, b2)   # one-time; cache in real use
    out = feed_forward(x, params)
    out = jax.block_until_ready(out)

    # Reference check in plain JAX (eval-mode dropout = identity).
    # Tolerances loosened for bf16 MXU operands (f32 accumulation).
    ref = jnp.maximum(x.reshape(-1, n_embd) @ w1 + b1, 0.0) @ w2 + b2
    ref = ref.reshape(B, T, n_embd)
    assert jnp.allclose(out, ref, atol=3e-2, rtol=3e-2), "mismatch vs reference"

    print("KERNEL_OK")
</pallas_src>

<mosaic_0001>
module attributes {stable_mosaic.version = 11 : i64} {
  func.func @ffn_kernel(%arg0: i32, %arg1: i32, %arg2: memref<8x384xf32, #tpu.memory_space<vmem>>, %arg3: memref<384x1536xbf16, #tpu.memory_space<vmem>>, %arg4: memref<1x1536xf32, #tpu.memory_space<vmem>>, %arg5: memref<1536x384xbf16, #tpu.memory_space<vmem>>, %arg6: memref<1x384xf32, #tpu.memory_space<vmem>>, %arg7: memref<8x384xf32, #tpu.memory_space<vmem>>) attributes {dimension_semantics = [#tpu.dimension_semantics<parallel>, #tpu.dimension_semantics<arbitrary>], iteration_bounds = array<i64: 2, 1>, scalar_prefetch = 0 : i64, scratch_operands = 0 : i64, tpu.core_type = #tpu.core_type<tc>, window_params = [{transform_indices = @transform_0, window_bounds = array<i64: 8, 384>}, {transform_indices = @transform_1, window_bounds = array<i64: 384, 1536>}, {transform_indices = @transform_2, window_bounds = array<i64: 1, 1536>}, {transform_indices = @transform_3, window_bounds = array<i64: 1536, 384>}, {pipeline_mode = #tpu.pipeline_mode<synchronous>, transform_indices = @transform_4, window_bounds = array<i64: 1, 384>}, {transform_indices = @transform_5, window_bounds = array<i64: 8, 384>}]} {
    %c0 = arith.constant 0 : index
    %c0_0 = arith.constant 0 : index
    %0 = vector.load %arg2[%c0, %c0_0] : memref<8x384xf32, #tpu.memory_space<vmem>>, vector<8x384xf32>
    %1 = arith.truncf %0 : vector<8x384xf32> to vector<8x384xbf16>
    %c0_1 = arith.constant 0 : index
    %c0_2 = arith.constant 0 : index
    %2 = vector.load %arg3[%c0_1, %c0_2] : memref<384x1536xbf16, #tpu.memory_space<vmem>>, vector<384x1536xbf16>
    %cst = arith.constant dense<0.000000e+00> : vector<8x1536xf32>
    %3 = tpu.matmul %1, %2, %cst {dimension_numbers = #tpu.dot_dimension_numbers<[1], [0], [0], [1], [0, 0, 1, 1], [], []>} : vector<8x384xbf16>, vector<384x1536xbf16>, vector<8x1536xf32> -> vector<8x1536xf32>
    %c0_3 = arith.constant 0 : index
    %c0_4 = arith.constant 0 : index
    %4 = vector.load %arg4[%c0_3, %c0_4] : memref<1x1536xf32, #tpu.memory_space<vmem>>, vector<1x1536xf32>
    %5 = vector.broadcast %4 : vector<1x1536xf32> to vector<8x1536xf32>
    %6 = arith.addf %3, %5 : vector<8x1536xf32>
    %cst_5 = arith.constant 0.000000e+00 : f32
    %7 = vector.broadcast %cst_5 : f32 to vector<8x1536xf32>
    %8 = arith.maximumf %6, %7 : vector<8x1536xf32>
    %9 = arith.truncf %8 : vector<8x1536xf32> to vector<8x1536xbf16>
    %c0_6 = arith.constant 0 : index
    %c0_7 = arith.constant 0 : index
    %10 = vector.load %arg5[%c0_6, %c0_7] : memref<1536x384xbf16, #tpu.memory_space<vmem>>, vector<1536x384xbf16>
    %cst_8 = arith.constant dense<0.000000e+00> : vector<8x384xf32>
    %11 = tpu.matmul %9, %10, %cst_8 {dimension_numbers = #tpu.dot_dimension_numbers<[1], [0], [0], [1], [0, 0, 1, 1], [], []>} : vector<8x1536xbf16>, vector<1536x384xbf16>, vector<8x384xf32> -> vector<8x384xf32>
    %c0_i32 = arith.constant 0 : i32
    %12 = arith.cmpi eq, %arg1, %c0_i32 : i32
    %13 = arith.extui %12 : i1 to i32
    %c0_i32_9 = arith.constant 0 : i32
    %14 = arith.cmpi ne, %13, %c0_i32_9 : i32
    scf.if %14 {
      %c0_14 = arith.constant 0 : index
      %c0_15 = arith.constant 0 : index
      %21 = vector.load %arg7[%c0_14, %c0_15] : memref<8x384xf32, #tpu.memory_space<vmem>>, vector<8x384xf32>
      tpu.vector_store %arg7[%c0_14, %c0_15], %11 {strides = array<i32>} : memref<8x384xf32, #tpu.memory_space<vmem>>, vector<8x384xf32>,
    } else {
    }
    %c0_i32_10 = arith.constant 0 : i32
    %15 = arith.cmpi ne, %arg1, %c0_i32_10 : i32
    %16 = arith.extui %15 : i1 to i32
    %c0_i32_11 = arith.constant 0 : i32
    %17 = arith.cmpi ne, %16, %c0_i32_11 : i32
    scf.if %17 {
      %c0_14 = arith.constant 0 : index
      %c0_15 = arith.constant 0 : index
      %21 = vector.load %arg7[%c0_14, %c0_15] : memref<8x384xf32, #tpu.memory_space<vmem>>, vector<8x384xf32>
      %22 = arith.addf %21, %11 : vector<8x384xf32>
      %c0_16 = arith.constant 0 : index
      %c0_17 = arith.constant 0 : index
      %23 = vector.load %arg7[%c0_16, %c0_17] : memref<8x384xf32, #tpu.memory_space<vmem>>, vector<8x384xf32>
      tpu.vector_store %arg7[%c0_16, %c0_17], %22 {strides = array<i32>} : memref<8x384xf32, #tpu.memory_space<vmem>>, vector<8x384xf32>,
    } else {
    }
    %c0_i32_12 = arith.constant 0 : i32
    %18 = arith.cmpi eq, %arg1, %c0_i32_12 : i32
    %19 = arith.extui %18 : i1 to i32
    %c0_i32_13 = arith.constant 0 : i32
    %20 = arith.cmpi ne, %19, %c0_i32_13 : i32
    scf.if %20 {
      %c0_14 = arith.constant 0 : index
      %c0_15 = arith.constant 0 : index
      %21 = vector.load %arg7[%c0_14, %c0_15] : memref<8x384xf32, #tpu.memory_space<vmem>>, vector<8x384xf32>
      %c0_16 = arith.constant 0 : index
      %c0_17 = arith.constant 0 : index
      %22 = vector.load %arg6[%c0_16, %c0_17] : memref<1x384xf32, #tpu.memory_space<vmem>>, vector<1x384xf32>
      %23 = vector.broadcast %22 : vector<1x384xf32> to vector<8x384xf32>
      %24 = arith.addf %21, %23 : vector<8x384xf32>
      %c0_18 = arith.constant 0 : index
      %c0_19 = arith.constant 0 : index
      %25 = vector.load %arg7[%c0_18, %c0_19] : memref<8x384xf32, #tpu.memory_space<vmem>>, vector<8x384xf32>
      tpu.vector_store %arg7[%c0_18, %c0_19], %24 {strides = array<i32>} : memref<8x384xf32, #tpu.memory_space<vmem>>, vector<8x384xf32>,
    } else {
    }
    return
  }
  func.func @transform_0(%arg0: i32, %arg1: i32) -> (i32, i32) {
    %c0_i32 = arith.constant 0 : i32
    %c0_i32_0 = arith.constant 0 : i32
    return %arg0, %c0_i32 : i32, i32
  }
  func.func @transform_1(%arg0: i32, %arg1: i32) -> (i32, i32) {
    %c0_i32 = arith.constant 0 : i32
    %c0_i32_0 = arith.constant 0 : i32
    return %c0_i32, %arg1 : i32, i32
  }
  func.func @transform_2(%arg0: i32, %arg1: i32) -> (i32, i32) {
    %c0_i32 = arith.constant 0 : i32
    %c0_i32_0 = arith.constant 0 : i32
    return %c0_i32, %arg1 : i32, i32
  }
  func.func @transform_3(%arg0: i32, %arg1: i32) -> (i32, i32) {
    %c0_i32 = arith.constant 0 : i32
    %c0_i32_0 = arith.constant 0 : i32
    return %arg1, %c0_i32 : i32, i32
  }
  func.func @transform_4(%arg0: i32, %arg1: i32) -> (i32, i32) {
    %c0_i32 = arith.constant 0 : i32
    %c0_i32_0 = arith.constant 0 : i32
    %c0_i32_1 = arith.constant 0 : i32
    return %c0_i32, %c0_i32_0 : i32, i32
  }
  func.func @transform_5(%arg0: i32, %arg1: i32) -> (i32, i32) {
    %c0_i32 = arith.constant 0 : i32
    %c0_i32_0 = arith.constant 0 : i32
    return %arg0, %c0_i32 : i32, i32
  }
}

</mosaic_0001>

<bundles_post_ra>
// kernel: tpu_custom_call.1
= control target key start
LH: loop header
LB: loop body
LE: loop exit
PB: predicated region body
PF: predicated region fallthrough
CT: control target
= control target key end

     0   :  { %s7650_s0 = inlined_call_operand.hbm [shape: f32[16,384], index: 0, kind: input, shape index: {}]   ;;  %s7651_s1 = inlined_call_operand.hbm [shape: bf16[384,1536], index: 1, kind: input, shape index: {}]   ;;  %s7652_s2 = inlined_call_operand.hbm [shape: f32[1,1536], index: 2, kind: input, shape index: {}]   ;;  %s7653_s3 = inlined_call_operand.hbm [shape: bf16[1536,384], index: 3, kind: input, shape index: {}]   ;;  %s7654_s4 = inlined_call_operand.hbm [shape: f32[1,384], index: 4, kind: input, shape index: {}]   ;;  %s7655_s5 = inlined_call_operand.hbm [shape: f32[16,384], index: 5, kind: output, shape index: {}]  }
   0x1   :  { %7660 = sst [smem:[#allocation16_spill]] %s7651_s1 }
   0x2   :  { %10 = vsyncpa [#allocation3], 0 }
   0x3   :  { %12 = vsyncpa [#allocation3 + $0x1], 0 }
   0x4   :  { %13 = vsyncpa [#allocation6], 0 }
   0x5   :  { %14 = vsyncpa [#allocation9], 0 }
   0x6   :  { %15 = vsyncpa [#allocation4], 0 }
   0x7   :  { %17 = vsyncpa [#allocation4 + $0x1], 0  ;;  %s7206_s18 = smov 0   ;;  %s7208_s19 = smov 0  }
   0x8   :  { %s7210_s20 = smov 0   ;;  %s7212_s21 = smov 0  }
   0x9   :  { %s7214_s22 = smov 0   ;;  %s7216_s23 = smov 0  }
   0xa LB: > { %s5242_s24 = sadd.s32 4294967295, %s7163_s23   ;;  %p5244_p0 = scmp.ge.s32.totalorder %s7163_s23, 1  ;;  %s7163_s23 = sphi %s7216_s23, %s23_s23   ;;  %s7159_s22 = sphi %s7214_s22, %s7681_s22   ;;  %s7155_s21 = sphi %s7212_s21, %s7680_s21   ;;  %s7151_s20 = sphi %s7210_s20, %s7679_s20   ;;  %s7147_s19 = sphi %s7208_s19, %s7678_s19   ;;  %s7143_s18 = sphi %s7206_s18, %s7677_s18  }
   0xb   : > { %p7240_p1 = scmp.eq.s32.totalorder %s5242_s24, 0  ;;  %p191_p2 = scmp.lt.s32.totalorder %s7163_s23, 3 }
   0xc   : > { %s7165_s27 = smov [#allocation5]   ;;  %s7166_s30 = smov [#allocation8]  }
   0xd   : > { %s7661_s25 = scalar_select %p7240_p1, 1, 0 }
   0xe   : > { %p7245_p3 = pnand %p5244_p0, %p191_p2  ;;  %s206_s28 = sshll.u32 %s7165_s27, 4  ;;  %s7249_s28 = int_to_ptr.vmem [resolvable:$true] %s206_s28 }
   0xf   : > { %s237_s6 = sshll.u32 %s7166_s30, 4  ;;  %s7664_s1 = sld [smem:[#allocation16_spill]]  ;;  %s7260_s6 = int_to_ptr.vmem [resolvable:$true] %s237_s6 }
  0x10   : > { %s7662_s26 = scalar_select %p7245_p3, 1, 0 }
  0x11   : > { %p6027_p4 = pneg %p7245_p3 }
  0x13   : > { %p7256_p6 = pnand %p6027_p4, %p7240_p1 }
  0x15   : > { %s6931_s9 = scalar_lea.hbm %s7664_s1, 36864  ;;  %p7270_p8 = pneg %p7256_p6 }
  0x16   : > { %p6932_p7 = scmp.ne.s32.totalorder %s7664_s1, %s6931_s9  ;;  %p6938_p11 = scmp.lt.u32.totalorder %s6931_s9, %s7664_s1 }
  0x18   : > { %p6934_p9 = pnand %p7270_p8, %p6932_p7 }
  0x1a   : > { %p6935_p10 = pneg %p6934_p9 }
  0x1c   : > { %p6940_p12 = pnand %p6938_p11, %p6935_p10 }
  0x1e   : > { %6943 = shalt.err (!%p6940_p12)
}
  0x1f   : > { %s6944_s15 = scalar_lea.vmem %s7249_s28, 36864  ;;  %p6952_p4 = scmp.lt.s32.totalorder %s7249_s28, %s7249_s28 }
  0x20   : > { %p6945_p13 = scmp.ne.s32.totalorder %s7249_s28, %s6944_s15  ;;  %p6953_p5 = scmp.lt.s32.totalorder %s6944_s15, %s6944_s15 }
  0x22   : > { %p6947_p0 = pnand %p6945_p13, %p7270_p8  ;;  %p6954_p7 = por %p6953_p5, %p6952_p4 }
  0x24   : > { %p6948_p2 = pneg %p6947_p0 }
  0x26   : > { %p6955_p9 = pnand %p6954_p7, %p6948_p2 }
  0x28   : > { %6958 = shalt.err (!%p6955_p9)
}
  0x29   : > { %s7167_s16 = smov 768   ;;  %s7168_s17 = smov 48  }
  0x2a   : > { %6030 = dma.hbm_to_vmem [thread:$0]  (!%p7256_p6), %s7664_s1, 36864, %s7249_s28, [#allocation6], %s7167_s16, %s7167_s16, %s7168_s17  }
  0x2b   : > { %s6959_s9 = scalar_lea.hbm %s7653_s3, 36864 }
  0x2c   : > { %p6960_p5 = scmp.ne.s32.totalorder %s7653_s3, %s6959_s9  ;;  %p6966_p12 = scmp.lt.u32.totalorder %s6959_s9, %s7653_s3 }
  0x2e   : > { %p6962_p10 = pnand %p6960_p5, %p7270_p8 }
  0x30   : > { %p6963_p11 = pneg %p6962_p10 }
  0x32   : > { %p6968_p13 = pnand %p6966_p12, %p6963_p11 }
  0x34   : > { %6971 = shalt.err (!%p6968_p13)
}
  0x35   : > { %s6972_s28 = scalar_lea.vmem %s7260_s6, 36864  ;;  %p6980_p7 = scmp.lt.s32.totalorder %s7260_s6, %s7260_s6 }
  0x36   : > { %p6973_p0 = scmp.ne.s32.totalorder %s7260_s6, %s6972_s28  ;;  %p6981_p9 = scmp.lt.s32.totalorder %s6972_s28, %s6972_s28 }
  0x38   : > { %p6975_p2 = pnand %p6973_p0, %p7270_p8  ;;  %p6982_p5 = por %p6981_p9, %p6980_p7 }
  0x3a   : > { %p6976_p4 = pneg %p6975_p2 }
  0x3c   : > { %p6983_p10 = pnand %p6982_p5, %p6976_p4 }
  0x3e   : > { %6986 = shalt.err (!%p6983_p10)
}
  0x3f   : > { %s7169_s15 = smov 192   ;;  %s7170_s16 = smov 12  }
  0x40   : > { %6036 = dma.hbm_to_vmem [thread:$0]  (!%p7256_p6), %s7653_s3, 36864, %s7260_s6, [#allocation9], %s7169_s15, %s7169_s15, %s7170_s16  }
  0x41   : > { %s7171_s30 = smov [#allocation7]   ;;  %s7172_s8 = smov [#allocation10]  }
  0x42   : > { %s223_s7 = sshll.u32 %s7171_s30, 4  ;;  %s251_s9 = sshll.u32 %s7172_s8, 4  ;;  %s224_s7 = int_to_ptr.vmem [resolvable:$true] %s223_s7  ;;  %s7314_s9 = int_to_ptr.vmem [resolvable:$true] %s251_s9 }
  0x43   : > { %s6987_s13 = scalar_lea.hbm %s7652_s2, 192 }
  0x44   : > { %p6988_p11 = scmp.ne.s32.totalorder %s7652_s2, %s6987_s13  ;;  %p6994_p0 = scmp.lt.u32.totalorder %s6987_s13, %s7652_s2 }
  0x46   : > { %p6990_p12 = pnand %p6988_p11, %p7270_p8 }
  0x48   : > { %p6991_p13 = pneg %p6990_p12 }
  0x4a   : > { %p6996_p2 = pnand %p6994_p0, %p6991_p13 }
  0x4c   : > { %6999 = shalt.err (!%p6996_p2)
}
  0x4d   : > { %s7000_s15 = scalar_lea.vmem %s224_s7, 192  ;;  %p7008_p5 = scmp.lt.s32.totalorder %s224_s7, %s224_s7 }
  0x4e   : > { %p7001_p4 = scmp.ne.s32.totalorder %s224_s7, %s7000_s15  ;;  %p7009_p10 = scmp.lt.s32.totalorder %s7000_s15, %s7000_s15 }
  0x50   : > { %p7003_p7 = pnand %p7001_p4, %p7270_p8  ;;  %p7010_p3 = por %p7009_p10, %p7008_p5 }
  0x52   : > { %p7004_p9 = pneg %p7003_p7 }
  0x54   : > { %p7011_p1 = pnand %p7010_p3, %p7004_p9 }
  0x56   : > { %7014 = shalt.err (!%p7011_p1)
}
  0x57   : > { %6033 = dma.hbm_to_vmem [thread:$0]  (!%p7256_p6), %s7652_s2, 192, %s224_s7, [#allocation6]  }
  0x58   : > { %s7015_s10 = scalar_lea.hbm %s7654_s4, 48 }
  0x59   : > { %p7016_p11 = scmp.ne.s32.totalorder %s7654_s4, %s7015_s10  ;;  %p7022_p1 = scmp.lt.u32.totalorder %s7015_s10, %s7654_s4 }
  0x5b   : > { %p7018_p12 = pnand %p7016_p11, %p7270_p8 }
  0x5d   : > { %p7019_p13 = pneg %p7018_p12 }
  0x5f   : > { %p7024_p3 = pnand %p7022_p1, %p7019_p13 }
  0x61   : > { %7027 = shalt.err (!%p7024_p3)
}
  0x62   : > { %s7028_s7 = scalar_lea.vmem %s7314_s9, 48  ;;  %s7035_s17 = scalar_lea.vmem %s7314_s9, 64 }
  0x63   : > { %p7029_p0 = scmp.ne.s32.totalorder %s7314_s9, %s7028_s7  ;;  %p7036_p7 = scmp.lt.s32.totalorder %s7314_s9, %s7314_s9 }
  0x64   : > { %p7037_p9 = scmp.lt.s32.totalorder %s7035_s17, %s7028_s7 }
  0x65   : > { %p7031_p2 = pnand %p7029_p0, %p7270_p8 }
  0x66   : > { %p7038_p5 = por %p7037_p9, %p7036_p7 }
  0x67   : > { %p7032_p4 = pneg %p7031_p2 }
  0x69   : > { %p7039_p10 = pnand %p7038_p5, %p7032_p4 }
  0x6b   : > { %7042 = shalt.err (!%p7039_p10)
}
  0x6c   : > { %6039 = dma.hbm_to_vmem [thread:$0]  (!%p7256_p6), %s7654_s4, 48, %s7314_s9, [#allocation9]  }
  0x6d   : > { %s5243_s12 = sadd.s32 4294967294, %s7163_s23   ;;  %s35_s16 = sadd.s32 1, %s7159_s22 }
  0x6e   : > { %p37_p8 = scmp.ge.s32.totalorder %s35_s16, 2  ;;  %s42_s29 = sadd.s32 1, %s7151_s20 }
  0x6f   : > { %p49_p11 = scmp.ne.s32.totalorder %s7151_s20, %s7147_s19  ;;  %p50_p12 = scmp.eq.s32.totalorder %s7163_s23, 0 }
  0x70   : > { %s7683_s16 = smov (%p37_p8, %s35_s16), 0  ;;  %p55_p1 = scmp.ne.s32.totalorder %s7147_s19, %s7143_s18 }
  0x71   : > { %p7366_p13 = por %p50_p12, %p49_p11  ;;  %s39_s9 = ssub.s32 %s7159_s22, %s7683_s16 }
  0x72   : > { %p178_p6 = scmp.eq.s32.totalorder %s5242_s24, 1  ;;  %p40_p3 = scmp.eq.s32.totalorder %s39_s9, 0 }
  0x73   : > { %p7667_p0 = scmp.ne.s32.totalorder %s7661_s25, 0  ;;  %p184_p7 = scmp.eq.s32.totalorder %s5243_s12, 1 }
  0x74   : > { %p7382_p4 = por %p178_p6, %p49_p11  ;;  %p6052_p5 = scmp.lt.s32.totalorder %s7163_s23, 2 }
  0x75   : > { %p7378_p2 = por %p7667_p0, %p55_p1  ;;  %p7389_p9 = por %p184_p7, %p55_p1 }
  0x76   : > { %s7669_s8 = scalar_select %p7382_p4, 1, 0 }
  0x77   : > { %s7387_s10 = scalar_select %p40_p3, %s7151_s20, %s42_s29  }
  0x78   : > { %s7670_s11 = scalar_select %p7389_p9, 1, 0 }
  0x79   : > { %s262_s13 = sand.u32 1, %s7151_s20   ;;  %s6004_s24 = smul.u32 384, %s7159_s22 }
  0x7a   : > { %s6003_s14 = smul.u32 24, %s262_s13  ;;  %p7398_p10 = pnand %p6052_p5, %p7366_p13 }
  0x7b   : > { %s7405_s6 = scalar_lea.hbm %s7650_s0, %s6004_s24  ;;  %s263_s29 = scalar_lea.sflag [#allocation3], %s262_s13 }
  0x7c   : > { %s266_s15 = scalar_lea.vmem [#allocation2], %s6003_s14  ;;  %s7043_s27 = scalar_lea.hbm %s7405_s6, 384 }
  0x7d   : > { %s274_s12 = sshll.u32 %s266_s15, 4  ;;  %p7044_p8 = scmp.ne.s32.totalorder %s7405_s6, %s7043_s27  ;;  %s7407_s12 = int_to_ptr.vmem [resolvable:$true] %s274_s12 }
  0x7e   : > { %p7045_p11 = pneg %p7398_p10  ;;  %s7048_s7 = scalar_lea.hbm %s7650_s0, 768 }
  0x7f   : > { %p7049_p1 = scmp.lt.u32.totalorder %s7405_s6, %s7650_s0  ;;  %p7050_p6 = scmp.lt.u32.totalorder %s7048_s7, %s7043_s27 }
  0x80   : > { %p7046_p12 = pnand %p7045_p11, %p7044_p8  ;;  %p7052_p0 = scmp.lt.u32.totalorder %s7043_s27, %s7405_s6 }
  0x81   : > { %p7051_p3 = por %p7050_p6, %p7049_p1 }
  0x82   : > { %p7047_p13 = pneg %p7046_p12 }
  0x83   : > { %p7053_p7 = por %p7052_p0, %p7051_p3 }
  0x85   : > { %p7054_p5 = pnand %p7053_p7, %p7047_p13 }
  0x87   : > { %7057 = shalt.err (!%p7054_p5)
}
  0x88   : > { %s7058_s13 = scalar_lea.vmem %s7407_s12, 384  ;;  %s7173_s14 = smov [#allocation2]  }
  0x89   : > { %p7059_p8 = scmp.ne.s32.totalorder %s7407_s12, %s7058_s13  ;;  %s7063_s15 = sshll.u32 %s7173_s14, 4  ;;  %s7064_s15 = int_to_ptr.vmem [resolvable:$false] %s7063_s15 }
  0x8a   : > { %s7065_s1 = scalar_lea.vmem %s7064_s15, 768  ;;  %p7066_p4 = scmp.lt.s32.totalorder %s7407_s12, %s7064_s15 }
  0x8b   : > { %p7061_p12 = pnand %p7059_p8, %p7045_p11  ;;  %p7067_p1 = scmp.lt.s32.totalorder %s7065_s1, %s7058_s13 }
  0x8d   : > { %p7062_p9 = pneg %p7061_p12  ;;  %p7068_p6 = por %p7067_p1, %p7066_p4 }
  0x8f   : > { %p7069_p3 = pnand %p7068_p6, %p7062_p9 }
  0x91   : > { %7072 = shalt.err (!%p7069_p3)
}
  0x92   : > { %6043 = dma.hbm_to_vmem [thread:$0]  (!%p7398_p10), %s7405_s6, 384, %s7407_s12, %s263_s29  }
  0x93   : > { %p7672_p13 = scmp.ne.s32.totalorder %s7662_s26, 0 }
  0x94   : > { %s7437_s27 = sand.u32 (!%p7672_p13), 1, %s7147_s19  }
  0x95   : > { %283 = sbr.rel (%p7672_p13) target bundleno = 1002 (0x3ea), region = 40  ;;  %s286_s24 = scalar_lea.sflag (!%p7672_p13), [#allocation3], %s7437_s27 }
  0x96   : > { %s6005_s9 = smul.u32 (!%p7672_p13), 24, %s7437_s27 }
  0x98   : > { %s7443_s7 = scalar_lea.vmem (!%p7672_p13), [#allocation2], %s6005_s9 }
  0x9c   : > { %7126 = dma.done.wait (%p7378_p2), %s286_s24, 384  }
  0x9d   : > { %7128 = vsyncadd (%p7378_p2), %s286_s24, 4294966912  ;;  %p7673_p4 = scmp.ne.s32.totalorder %s7661_s25, 0 }
  0x9f   : > { %7130 = dma.done.wait (%p7673_p4), [#allocation6], 37056  }
  0xa0   : > { %7132 = vsyncadd (%p7673_p4), [#allocation6], 4294930240 }
  0xa1   : > { %7134 = dma.done.wait (%p7673_p4), [#allocation9], 36912  }
  0xa2   : > { %7136 = vsyncadd (%p7673_p4), [#allocation9], 4294930384  ;;  %v6115_v0 = vld [vmem:[#allocation5 + $0x4] ss:$48 sps:$4 sm:$0xff]   ;;  %v6117_v1 = vld [vmem:[#allocation5 + $0xc] ss:$48 sps:$4 sm:$0xff]  }
  0xa3   : > { %2134 = vmatprep.subr.bf16.mxu0 %v6115_v0  ;;  %v6119_v2 = vld [vmem:[#allocation5] ss:$48 sps:$4 sm:$0xff]   ;;  %v6120_v3 = vld [vmem:[#allocation5 + $0x8] ss:$48 sps:$4 sm:$0xff]   ;;  %2216 = vmatprep.subr.bf16.mxu1 %v6117_v1  ;;  %v6121_v4 = vld [vmem:[#allocation5 + $0x64] ss:$48 sps:$4 sm:$0xff]  }
  0xa4   : > { %2135 = vmatpush1.bf16.msra.mxu0 %v6119_v2  ;;  %2217 = vmatpush1.bf16.msra.mxu1 %v6120_v3  ;;  %v6123_v5 = vld [vmem:[#allocation5 + $0x6c] ss:$48 sps:$4 sm:$0xff]   ;;  %v6125_v6 = vld [vmem:[#allocation5 + $0x60] ss:$48 sps:$4 sm:$0xff]   ;;  %v6126_v7 = vld [vmem:[#allocation5 + $0x68] ss:$48 sps:$4 sm:$0xff]  }
  0xa5   : > { %2136 = vmatprep.subr.bf16.mxu0 %v6121_v4  ;;  %2218 = vmatprep.subr.bf16.mxu1 %v6123_v5  ;;  %v6127_v8 = vld [vmem:[#allocation5 + $0xc4] ss:$48 sps:$4 sm:$0xff]   ;;  %v6129_v9 = vld [vmem:[#allocation5 + $0xcc] ss:$48 sps:$4 sm:$0xff]   ;;  %v6131_v10 = vld [vmem:[#allocation5 + $0xc0] ss:$48 sps:$4 sm:$0xff]  }
  0xa6   : > { %v6132_v11 = vld [vmem:[#allocation5 + $0xc8] ss:$48 sps:$4 sm:$0xff]   ;;  %v6133_v12 = vld [vmem:[#allocation5 + $0x124] ss:$48 sps:$4 sm:$0xff]   ;;  %v6135_v13 = vld [vmem:[#allocation5 + $0x12c] ss:$48 sps:$4 sm:$0xff]  }
  0xa7   : > { %v6137_v14 = vld [vmem:[#allocation5 + $0x120] ss:$48 sps:$4 sm:$0xff]   ;;  %v6138_v15 = vld [vmem:[#allocation5 + $0x128] ss:$48 sps:$4 sm:$0xff]   ;;  %v6139_v16 = vld [vmem:[#allocation5 + $0x184] ss:$48 sps:$4 sm:$0xff]  }
  0xa8   : > { %2137 = vmatpush1.bf16.msra.mxu0 %v6125_v6  ;;  %2219 = vmatpush1.bf16.msra.mxu1 %v6126_v7  ;;  %v6141_v17 = vld [vmem:[#allocation5 + $0x18c] ss:$48 sps:$4 sm:$0xff]   ;;  %v6143_v18 = vld [vmem:[#allocation5 + $0x180] ss:$48 sps:$4 sm:$0xff]   ;;  %v6144_v19 = vld [vmem:[#allocation5 + $0x188] ss:$48 sps:$4 sm:$0xff]  }
  0xa9   : > { %2138 = vmatprep.subr.bf16.mxu0 %v6127_v8  ;;  %2220 = vmatprep.subr.bf16.mxu1 %v6129_v9  ;;  %v6145_v20 = vld [vmem:[#allocation5 + $0x1e4] ss:$48 sps:$4 sm:$0xff]   ;;  %v6147_v21 = vld [vmem:[#allocation5 + $0x1ec] ss:$48 sps:$4 sm:$0xff]   ;;  %v6149_v22 = vld [vmem:[#allocation5 + $0x1e0] ss:$48 sps:$4 sm:$0xff]  }
  0xaa   : > { %v6150_v23 = vld [vmem:[#allocation5 + $0x1e8] ss:$48 sps:$4 sm:$0xff]   ;;  %v6151_v24 = vld [vmem:[#allocation5 + $0x244] ss:$48 sps:$4 sm:$0xff]   ;;  %v6153_v25 = vld [vmem:[#allocation5 + $0x24c] ss:$48 sps:$4 sm:$0xff]  }
  0xab   : > { %v6155_v26 = vld [vmem:[#allocation5 + $0x240] ss:$48 sps:$4 sm:$0xff]   ;;  %v6156_v27 = vld [vmem:[#allocation5 + $0x248] ss:$48 sps:$4 sm:$0xff]   ;;  %v6157_v28 = vld [vmem:[#allocation5 + $0x2a4] ss:$48 sps:$4 sm:$0xff]  }
  0xac   : > { %2139 = vmatpush1.bf16.msra.mxu0 %v6131_v10  ;;  %2221 = vmatpush1.bf16.msra.mxu1 %v6132_v11  ;;  %v6159_v29 = vld [vmem:[#allocation5 + $0x2ac] ss:$48 sps:$4 sm:$0xff]   ;;  %v6161_v30 = vld [vmem:[#allocation5 + $0x2a0] ss:$48 sps:$4 sm:$0xff]   ;;  %v6162_v31 = vld [vmem:[#allocation5 + $0x2a8] ss:$48 sps:$4 sm:$0xff]  }
  0xad   : > { %2140 = vmatprep.subr.bf16.mxu0 %v6133_v12  ;;  %2222 = vmatprep.subr.bf16.mxu1 %v6135_v13  ;;  %v6163_v32 = vld [vmem:[#allocation5 + $0x304] ss:$48 sps:$4 sm:$0xff]   ;;  %v6165_v33 = vld [vmem:[#allocation5 + $0x30c] ss:$48 sps:$4 sm:$0xff]   ;;  %v6167_v34 = vld [vmem:[#allocation5 + $0x300] ss:$48 sps:$4 sm:$0xff]  }
  0xae   : > { %v6168_v35 = vld [vmem:[#allocation5 + $0x308] ss:$48 sps:$4 sm:$0xff]   ;;  %v6169_v36 = vld [vmem:[#allocation5 + $0x364] ss:$48 sps:$4 sm:$0xff]   ;;  %v6171_v37 = vld [vmem:[#allocation5 + $0x36c] ss:$48 sps:$4 sm:$0xff]  }
  0xaf   : > { %v6173_v38 = vld [vmem:[#allocation5 + $0x360] ss:$48 sps:$4 sm:$0xff]   ;;  %v6174_v39 = vld [vmem:[#allocation5 + $0x368] ss:$48 sps:$4 sm:$0xff]   ;;  %v6175_v40 = vld [vmem:[#allocation5 + $0x3c4] ss:$48 sps:$4 sm:$0xff]  }
  0xb0   : > { %2141 = vmatpush1.bf16.msra.mxu0 %v6137_v14  ;;  %2223 = vmatpush1.bf16.msra.mxu1 %v6138_v15  ;;  %v6177_v41 = vld [vmem:[#allocation5 + $0x3cc] ss:$48 sps:$4 sm:$0xff]   ;;  %v6179_v42 = vld [vmem:[#allocation5 + $0x3c0] ss:$48 sps:$4 sm:$0xff]   ;;  %v6180_v43 = vld [vmem:[#allocation5 + $0x3c8] ss:$48 sps:$4 sm:$0xff]  }
  0xb1   : > { %2142 = vmatprep.subr.bf16.mxu0 %v6139_v16  ;;  %2224 = vmatprep.subr.bf16.mxu1 %v6141_v17  ;;  %v6181_v44 = vld [vmem:[#allocation5 + $0x424] ss:$48 sps:$4 sm:$0xff]   ;;  %v6183_v45 = vld [vmem:[#allocation5 + $0x42c] ss:$48 sps:$4 sm:$0xff]   ;;  %v6185_v47 = vld [vmem:[#allocation5 + $0x420] ss:$48 sps:$4 sm:$0xff]  }
  0xb2   : > { %v337_v46 = vld [vmem:[%s7443_s7 + $0x8] sm:$0xff]  ;;  %v336_v2 = vld [vmem:[%s7443_s7] sm:$0xff]  ;;  %v7174_v14 = vmov 0   ;;  %s7590_s25 = scalar_lea.vmem [#allocation11], %s6005_s9  ;;  %s6006_s26 = smul.u32 384, %s7155_s21 }
  0xb3   : > { %v7458_v48 = vpack.c.bf16 %v337_v46, %v337_v46  ;;  %v6186_v49 = vld [vmem:[#allocation5 + $0x428] ss:$48 sps:$4 sm:$0xff]   ;;  %v6187_v50 = vld [vmem:[#allocation5 + $0x484] ss:$48 sps:$4 sm:$0xff]   ;;  %v6189_v51 = vld [vmem:[#allocation5 + $0x48c] ss:$48 sps:$4 sm:$0xff]   ;;  %v7463_v5 = vpack.c.bf16 %v336_v2, %v336_v2 }
  0xb4   : > { %2143 = vmatpush1.bf16.msra.mxu0 %v6143_v18  ;;  %2225 = vmatpush1.bf16.msra.mxu1 %v6144_v19  ;;  %v6191_v52 = vld [vmem:[#allocation5 + $0x480] ss:$48 sps:$4 sm:$0xff]   ;;  %v6192_v53 = vld [vmem:[#allocation5 + $0x488] ss:$48 sps:$4 sm:$0xff]   ;;  %v6193_v54 = vld [vmem:[#allocation5 + $0x4e4] ss:$48 sps:$4 sm:$0xff]   ;;  %s7600_s12 = scalar_lea.hbm %s7655_s5, %s6006_s26 }
  0xb5   : > { %2144 = vmatprep.subr.bf16.mxu0 %v6145_v20  ;;  %2226 = vmatprep.subr.bf16.mxu1 %v6147_v21  ;;  %v6195_v55 = vld [vmem:[#allocation5 + $0x4ec] ss:$48 sps:$4 sm:$0xff]   ;;  %v6197_v56 = vld [vmem:[#allocation5 + $0x4e0] ss:$48 sps:$4 sm:$0xff]   ;;  %v6198_v57 = vld [vmem:[#allocation5 + $0x4e8] ss:$48 sps:$4 sm:$0xff]  }
  0xb6   : > { %2166 = vmatprep.mubr.bf16.mxu0 %v7458_v48  ;;  %2248 = vmatprep.mubr.bf16.mxu1 %v7458_v48  ;;  %v6199_v58 = vld [vmem:[#allocation5 + $0x544] ss:$48 sps:$4 sm:$0xff]   ;;  %v6201_v59 = vld [vmem:[#allocation5 + $0x54c] ss:$48 sps:$4 sm:$0xff]   ;;  %v6203_v60 = vld [vmem:[#allocation5 + $0x540] ss:$48 sps:$4 sm:$0xff]  }
  0xb7   : > { %v6204_v61 = vld [vmem:[#allocation5 + $0x548] ss:$48 sps:$4 sm:$0xff]   ;;  %v6205_v62 = vld [vmem:[#allocation5 + $0x5a4] ss:$48 sps:$4 sm:$0xff]   ;;  %v6207_v63 = vld [vmem:[#allocation5 + $0x5ac] ss:$48 sps:$4 sm:$0xff]  }
  0xb8   : > { %2145 = vmatpush1.bf16.msra.mxu0 %v6149_v22  ;;  %2227 = vmatpush1.bf16.msra.mxu1 %v6150_v23  ;;  %v6209_v0 = vld [vmem:[#allocation5 + $0x5a0] ss:$48 sps:$4 sm:$0xff]   ;;  %v6210_v1 = vld [vmem:[#allocation5 + $0x5a8] ss:$48 sps:$4 sm:$0xff]   ;;  %v6213_v3 = vld [vmem:[#allocation5 + $0x604] ss:$48 sps:$4 sm:$0xff]  }
  0xb9   : > { %2146 = vmatprep.subr.bf16.mxu0 %v6151_v24  ;;  %2228 = vmatprep.subr.bf16.mxu1 %v6153_v25  ;;  %v6216_v4 = vld [vmem:[#allocation5 + $0x60c] ss:$48 sps:$4 sm:$0xff]   ;;  %v6211_v6 = vld [vmem:[#allocation5 + $0x600] ss:$48 sps:$4 sm:$0xff]   ;;  %v6214_v7 = vld [vmem:[#allocation5 + $0x608] ss:$48 sps:$4 sm:$0xff]  }
  0xba   : > { %v6219_v8 = vld [vmem:[#allocation5 + $0x664] ss:$48 sps:$4 sm:$0xff]   ;;  %v6222_v9 = vld [vmem:[#allocation5 + $0x66c] ss:$48 sps:$4 sm:$0xff]   ;;  %v6217_v10 = vld [vmem:[#allocation5 + $0x660] ss:$48 sps:$4 sm:$0xff]  }
  0xbb   : > { %v6220_v11 = vld [vmem:[#allocation5 + $0x668] ss:$48 sps:$4 sm:$0xff]   ;;  %v6225_v12 = vld [vmem:[#allocation5 + $0x6c4] ss:$48 sps:$4 sm:$0xff]   ;;  %v6228_v13 = vld [vmem:[#allocation5 + $0x6cc] ss:$48 sps:$4 sm:$0xff]  }
  0xbc   : > { %2147 = vmatpush1.bf16.msra.mxu0 %v6155_v26  ;;  %2229 = vmatpush1.bf16.msra.mxu1 %v6156_v27  ;;  %v6223_v15 = vld [vmem:[#allocation5 + $0x6c0] ss:$48 sps:$4 sm:$0xff]   ;;  %v6226_v16 = vld [vmem:[#allocation5 + $0x6c8] ss:$48 sps:$4 sm:$0xff]   ;;  %v6231_v17 = vld [vmem:[#allocation5 + $0x724] ss:$48 sps:$4 sm:$0xff]  }
  0xbd   : > { %2148 = vmatprep.subr.bf16.mxu0 %v6157_v28  ;;  %2230 = vmatprep.subr.bf16.mxu1 %v6159_v29  ;;  %v6234_v18 = vld [vmem:[#allocation5 + $0x72c] ss:$48 sps:$4 sm:$0xff]   ;;  %v6229_v19 = vld [vmem:[#allocation5 + $0x720] ss:$48 sps:$4 sm:$0xff]   ;;  %v6232_v20 = vld [vmem:[#allocation5 + $0x728] ss:$48 sps:$4 sm:$0xff]  }
  0xbe   : > { %v6237_v21 = vld [vmem:[#allocation5 + $0x784] ss:$48 sps:$4 sm:$0xff]   ;;  %v6240_v22 = vld [vmem:[#allocation5 + $0x78c] ss:$48 sps:$4 sm:$0xff]   ;;  %v6235_v23 = vld [vmem:[#allocation5 + $0x780] ss:$48 sps:$4 sm:$0xff]  }
  0xbf   : > { %v6238_v24 = vld [vmem:[#allocation5 + $0x788] ss:$48 sps:$4 sm:$0xff]   ;;  %v6243_v25 = vld [vmem:[#allocation5 + $0x7e4] ss:$48 sps:$4 sm:$0xff]   ;;  %v6246_v26 = vld [vmem:[#allocation5 + $0x7ec] ss:$48 sps:$4 sm:$0xff]  }
  0xc0   : > { %2149 = vmatpush1.bf16.msra.mxu0 %v6161_v30  ;;  %2231 = vmatpush1.bf16.msra.mxu1 %v6162_v31  ;;  %v6241_v27 = vld [vmem:[#allocation5 + $0x7e0] ss:$48 sps:$4 sm:$0xff]   ;;  %v6244_v28 = vld [vmem:[#allocation5 + $0x7e8] ss:$48 sps:$4 sm:$0xff]   ;;  %v6249_v29 = vld [vmem:[#allocation5 + $0x844] ss:$48 sps:$4 sm:$0xff]  }
  0xc1   : > { %2150 = vmatprep.subr.bf16.mxu0 %v6163_v32  ;;  %2232 = vmatprep.subr.bf16.mxu1 %v6165_v33  ;;  %v6252_v30 = vld [vmem:[#allocation5 + $0x84c] ss:$48 sps:$4 sm:$0xff]   ;;  %v6247_v31 = vld [vmem:[#allocation5 + $0x840] ss:$48 sps:$4 sm:$0xff]   ;;  %v6250_v32 = vld [vmem:[#allocation5 + $0x848] ss:$48 sps:$4 sm:$0xff]  }
  0xc2   : > { %v6255_v33 = vld [vmem:[#allocation5 + $0x8a4] ss:$48 sps:$4 sm:$0xff]   ;;  %v6268_v46 = vld [vmem:[#allocation5 + $0x78] ss:$48 sps:$4 sm:$0xff]   ;;  %v6295_v2 = vld [vmem:[#allocation5 + $0x250] ss:$48 sps:$4 sm:$0xff]  }
  0xc3   : > { %s5120_s30 = sshll.u32 %s7590_s25, 4  ;;  %s5106_s29 = scalar_lea.sflag [#allocation4], %s7437_s27  ;;  %s7602_s30 = int_to_ptr.vmem [resolvable:$true] %s5120_s30 }
  0xc4   : > { %2151 = vmatpush1.bf16.msra.mxu0 %v6167_v34  ;;  %2233 = vmatpush1.bf16.msra.mxu1 %v6168_v35  ;;  %v6258_v34 = vld [vmem:[#allocation5 + $0x8ac] ss:$48 sps:$4 sm:$0xff]   ;;  %v6253_v35 = vld [vmem:[#allocation5 + $0x8a0] ss:$48 sps:$4 sm:$0xff]   ;;  %s7073_s17 = scalar_lea.vmem %s7602_s30, 384  ;;  %p7674_p9 = scmp.ne.s32.totalorder %s7669_s8, 0 }
  0xc5   : > { %2152 = vmatprep.subr.bf16.mxu0 %v6169_v36  ;;  %2234 = vmatprep.subr.bf16.mxu1 %v6171_v37  ;;  %v6256_v36 = vld [vmem:[#allocation5 + $0x8a8] ss:$48 sps:$4 sm:$0xff]   ;;  %p7074_p2 = scmp.ne.s32.totalorder %s7602_s30, %s7073_s17  ;;  %s7175_s21 = smov [#allocation11]  }
  0xc6   : > { %v338_v37 = vld [vmem:[%s7443_s7 + $0x10] sm:$0xff]  ;;  %s7077_s13 = sshll.u32 %s7175_s21, 4  ;;  %s7078_s13 = int_to_ptr.vmem [resolvable:$false] %s7077_s13 }
  0xc7   : > { %p7075_p10 = pnand %p7074_p2, %p7674_p9  ;;  %s7079_s14 = scalar_lea.vmem %s7078_s13, 768 }
  0xc8   : > { %2153 = vmatpush1.bf16.msra.mxu0 %v6173_v38  ;;  %2235 = vmatpush1.bf16.msra.mxu1 %v6174_v39  ;;  %v6261_v38 = vld [vmem:[#allocation5 + $0x14] ss:$48 sps:$4 sm:$0xff]   ;;  %v6264_v39 = vld [vmem:[#allocation5 + $0x1c] ss:$48 sps:$4 sm:$0xff]   ;;  %p7080_p0 = scmp.lt.s32.totalorder %s7602_s30, %s7078_s13  ;;  %p7081_p7 = scmp.lt.s32.totalorder %s7079_s14, %s7073_s17 }
  0xc9   : > { %2154 = vmatprep.subr.bf16.mxu0 %v6175_v40  ;;  %2236 = vmatprep.subr.bf16.mxu1 %v6177_v41  ;;  %v7470_v40 = vpack.c.bf16 %v338_v37, %v338_v37  ;;  %v6259_v41 = vld [vmem:[#allocation5 + $0x10] ss:$48 sps:$4 sm:$0xff]   ;;  %v6346_v37 = vld [vmem:[#allocation5 + $0x558] ss:$48 sps:$4 sm:$0xff]   ;;  %p7076_p11 = pneg %p7075_p10 }
  0xca   : > { %p7082_p5 = por %p7081_p7, %p7080_p0 }
  0xcc   : > { %2155 = vmatpush1.bf16.msra.mxu0 %v6179_v42  ;;  %2237 = vmatpush1.bf16.msra.mxu1 %v6180_v43  ;;  %v6262_v42 = vld [vmem:[#allocation5 + $0x18] ss:$48 sps:$4 sm:$0xff]   ;;  %v6267_v43 = vld [vmem:[#allocation5 + $0x74] ss:$48 sps:$4 sm:$0xff]   ;;  %p7083_p8 = pnand %p7082_p5, %p7076_p11 }
  0xcd   : > { %2156 = vmatprep.subr.bf16.mxu0 %v6181_v44  ;;  %2238 = vmatprep.subr.bf16.mxu1 %v6183_v45  ;;  %v6270_v44 = vld [vmem:[#allocation5 + $0x7c] ss:$48 sps:$4 sm:$0xff]   ;;  %v6265_v45 = vld [vmem:[#allocation5 + $0x70] ss:$48 sps:$4 sm:$0xff]  }
  0xd0   : > { %2157 = vmatpush1.bf16.msra.mxu0 %v6185_v47  ;;  %2239 = vmatpush1.bf16.msra.mxu1 %v6186_v49  ;;  %v6273_v47 = vld [vmem:[#allocation5 + $0xd4] ss:$48 sps:$4 sm:$0xff]   ;;  %v6276_v49 = vld [vmem:[#allocation5 + $0xdc] ss:$48 sps:$4 sm:$0xff]  }
  0xd1   : > { %2158 = vmatprep.subr.bf16.mxu0 %v6187_v50  ;;  %2240 = vmatprep.subr.bf16.mxu1 %v6189_v51  ;;  %v6271_v50 = vld [vmem:[#allocation5 + $0xd0] ss:$48 sps:$4 sm:$0xff]   ;;  %v6274_v51 = vld [vmem:[#allocation5 + $0xd8] ss:$48 sps:$4 sm:$0xff]  }
  0xd4   : > { %2159 = vmatpush1.bf16.msra.mxu0 %v6191_v52  ;;  %2241 = vmatpush1.bf16.msra.mxu1 %v6192_v53  ;;  %v6279_v52 = vld [vmem:[#allocation5 + $0x134] ss:$48 sps:$4 sm:$0xff]   ;;  %v6282_v53 = vld [vmem:[#allocation5 + $0x13c] ss:$48 sps:$4 sm:$0xff]  }
  0xd5   : > { %2160 = vmatprep.subr.bf16.mxu0 %v6193_v54  ;;  %2242 = vmatprep.subr.bf16.mxu1 %v6195_v55  ;;  %v6277_v54 = vld [vmem:[#allocation5 + $0x130] ss:$48 sps:$4 sm:$0xff]   ;;  %v6280_v55 = vld [vmem:[#allocation5 + $0x138] ss:$48 sps:$4 sm:$0xff]  }
  0xd8   : > { %2161 = vmatpush1.bf16.msra.mxu0 %v6197_v56  ;;  %2243 = vmatpush1.bf16.msra.mxu1 %v6198_v57  ;;  %v6285_v56 = vld [vmem:[#allocation5 + $0x194] ss:$48 sps:$4 sm:$0xff]   ;;  %v6288_v57 = vld [vmem:[#allocation5 + $0x19c] ss:$48 sps:$4 sm:$0xff]  }
  0xd9   : > { %2162 = vmatprep.subr.bf16.mxu0 %v6199_v58  ;;  %2244 = vmatprep.subr.bf16.mxu1 %v6201_v59  ;;  %v6283_v58 = vld [vmem:[#allocation5 + $0x190] ss:$48 sps:$4 sm:$0xff]   ;;  %v6286_v59 = vld [vmem:[#allocation5 + $0x198] ss:$48 sps:$4 sm:$0xff]  }
  0xdc   : > { %2163 = vmatpush1.bf16.msra.mxu0 %v6203_v60  ;;  %2245 = vmatpush1.bf16.msra.mxu1 %v6204_v61  ;;  %v6291_v60 = vld [vmem:[#allocation5 + $0x1f4] ss:$48 sps:$4 sm:$0xff]   ;;  %v6294_v61 = vld [vmem:[#allocation5 + $0x1fc] ss:$48 sps:$4 sm:$0xff]  }
  0xdd   : > { %2164 = vmatprep.subr.bf16.mxu0 %v6205_v62  ;;  %2246 = vmatprep.subr.bf16.mxu1 %v6207_v63  ;;  %v6289_v62 = vld [vmem:[#allocation5 + $0x1f0] ss:$48 sps:$4 sm:$0xff]   ;;  %v6292_v63 = vld [vmem:[#allocation5 + $0x1f8] ss:$48 sps:$4 sm:$0xff]  }
  0xe0   : > { %2165 = vmatpush1.bf16.msra.mxu0 %v6209_v0  ;;  %2247 = vmatpush1.bf16.msra.mxu1 %v6210_v1  ;;  %v6297_v0 = vld [vmem:[#allocation5 + $0x254] ss:$48 sps:$4 sm:$0xff]   ;;  %v6300_v1 = vld [vmem:[#allocation5 + $0x25c] ss:$48 sps:$4 sm:$0xff]  }
  0xe1   : > { %2175 = vmatprep.subr.bf16.mxu0 %v6213_v3  ;;  %2257 = vmatprep.subr.bf16.mxu1 %v6216_v4  ;;  %v6298_v3 = vld [vmem:[#allocation5 + $0x258] ss:$48 sps:$4 sm:$0xff]   ;;  %v6303_v4 = vld [vmem:[#allocation5 + $0x2b4] ss:$48 sps:$4 sm:$0xff]  }
  0xe3   : > { %2167 = vmatmul.mubr.bf16.vlgmr.msra.gmra.mrb[0].mxu0 %v7463_v5  ;;  %2249 = vmatmul.mubr.bf16.vlgmr.msra.gmra.mrb[0].mxu1 %v7463_v5 }
  0xe4   : > { %2176 = vmatpush1.bf16.msra.mxu0 %v6211_v6  ;;  %2258 = vmatpush1.bf16.msra.mxu1 %v6214_v7  ;;  %v6306_v6 = vld [vmem:[#allocation5 + $0x2bc] ss:$48 sps:$4 sm:$0xff]   ;;  %v6301_v7 = vld [vmem:[#allocation5 + $0x2b0] ss:$48 sps:$4 sm:$0xff]  }
  0xe5   : > { %2177 = vmatprep.subr.bf16.mxu0 %v6219_v8  ;;  %2259 = vmatprep.subr.bf16.mxu1 %v6222_v9  ;;  %v6304_v8 = vld [vmem:[#allocation5 + $0x2b8] ss:$48 sps:$4 sm:$0xff]   ;;  %v6309_v9 = vld [vmem:[#allocation5 + $0x314] ss:$48 sps:$4 sm:$0xff]  }
  0xe6   : > { %2207 = vmatprep.mubr.bf16.mxu0 %v7174_v14  ;;  %2289 = vmatprep.mubr.bf16.mxu1 %v7174_v14 }
  0xe8   : > { %2178 = vmatpush1.bf16.msra.mxu0 %v6217_v10  ;;  %2260 = vmatpush1.bf16.msra.mxu1 %v6220_v11  ;;  %v6312_v10 = vld [vmem:[#allocation5 + $0x31c] ss:$48 sps:$4 sm:$0xff]   ;;  %v6307_v11 = vld [vmem:[#allocation5 + $0x310] ss:$48 sps:$4 sm:$0xff]  }
  0xe9   : > { %2179 = vmatprep.subr.bf16.mxu0 %v6225_v12  ;;  %2261 = vmatprep.subr.bf16.mxu1 %v6228_v13  ;;  %v6310_v12 = vld [vmem:[#allocation5 + $0x318] ss:$48 sps:$4 sm:$0xff]   ;;  %v6315_v13 = vld [vmem:[#allocation5 + $0x374] ss:$48 sps:$4 sm:$0xff]  }
  0xec   : > { %2180 = vmatpush1.bf16.msra.mxu0 %v6223_v15  ;;  %2262 = vmatpush1.bf16.msra.mxu1 %v6226_v16  ;;  %v6318_v15 = vld [vmem:[#allocation5 + $0x37c] ss:$48 sps:$4 sm:$0xff]   ;;  %v6313_v16 = vld [vmem:[#allocation5 + $0x370] ss:$48 sps:$4 sm:$0xff]  }
  0xed   : > { %2181 = vmatprep.subr.bf16.mxu0 %v6231_v17  ;;  %2263 = vmatprep.subr.bf16.mxu1 %v6234_v18  ;;  %v6316_v17 = vld [vmem:[#allocation5 + $0x378] ss:$48 sps:$4 sm:$0xff]   ;;  %v6321_v18 = vld [vmem:[#allocation5 + $0x3d4] ss:$48 sps:$4 sm:$0xff]  }
  0xf0   : > { %2182 = vmatpush1.bf16.msra.mxu0 %v6229_v19  ;;  %2264 = vmatpush1.bf16.msra.mxu1 %v6232_v20  ;;  %v6324_v19 = vld [vmem:[#allocation5 + $0x3dc] ss:$48 sps:$4 sm:$0xff]   ;;  %v6319_v20 = vld [vmem:[#allocation5 + $0x3d0] ss:$48 sps:$4 sm:$0xff]  }
  0xf1   : > { %2183 = vmatprep.subr.bf16.mxu0 %v6237_v21  ;;  %2265 = vmatprep.subr.bf16.mxu1 %v6240_v22  ;;  %v6322_v21 = vld [vmem:[#allocation5 + $0x3d8] ss:$48 sps:$4 sm:$0xff]   ;;  %v6327_v22 = vld [vmem:[#allocation5 + $0x434] ss:$48 sps:$4 sm:$0xff]  }
  0xf4   : > { %2184 = vmatpush1.bf16.msra.mxu0 %v6235_v23  ;;  %2266 = vmatpush1.bf16.msra.mxu1 %v6238_v24  ;;  %v6330_v23 = vld [vmem:[#allocation5 + $0x43c] ss:$48 sps:$4 sm:$0xff]   ;;  %v6325_v24 = vld [vmem:[#allocation5 + $0x430] ss:$48 sps:$4 sm:$0xff]  }
  0xf5   : > { %2185 = vmatprep.subr.bf16.mxu0 %v6243_v25  ;;  %2267 = vmatprep.subr.bf16.mxu1 %v6246_v26  ;;  %v6328_v25 = vld [vmem:[#allocation5 + $0x438] ss:$48 sps:$4 sm:$0xff]   ;;  %v6333_v26 = vld [vmem:[#allocation5 + $0x494] ss:$48 sps:$4 sm:$0xff]  }
  0xf8   : > { %2186 = vmatpush1.bf16.msra.mxu0 %v6241_v27  ;;  %2268 = vmatpush1.bf16.msra.mxu1 %v6244_v28  ;;  %v6336_v27 = vld [vmem:[#allocation5 + $0x49c] ss:$48 sps:$4 sm:$0xff]   ;;  %v6331_v28 = vld [vmem:[#allocation5 + $0x490] ss:$48 sps:$4 sm:$0xff]  }
  0xf9   : > { %2187 = vmatprep.subr.bf16.mxu0 %v6249_v29  ;;  %2269 = vmatprep.subr.bf16.mxu1 %v6252_v30  ;;  %v6334_v29 = vld [vmem:[#allocation5 + $0x498] ss:$48 sps:$4 sm:$0xff]   ;;  %v6339_v30 = vld [vmem:[#allocation5 + $0x4f4] ss:$48 sps:$4 sm:$0xff]  }
  0xfc   : > { %2188 = vmatpush1.bf16.msra.mxu0 %v6247_v31  ;;  %2270 = vmatpush1.bf16.msra.mxu1 %v6250_v32  ;;  %v6342_v31 = vld [vmem:[#allocation5 + $0x4fc] ss:$48 sps:$4 sm:$0xff]   ;;  %v6337_v32 = vld [vmem:[#allocation5 + $0x4f0] ss:$48 sps:$4 sm:$0xff]  }
  0xfd   : > { %2189 = vmatprep.subr.bf16.mxu0 %v6255_v33  ;;  %2271 = vmatprep.subr.bf16.mxu1 %v6258_v34  ;;  %v6340_v33 = vld [vmem:[#allocation5 + $0x4f8] ss:$48 sps:$4 sm:$0xff]   ;;  %v6345_v34 = vld [vmem:[#allocation5 + $0x554] ss:$48 sps:$4 sm:$0xff]  }
 0x100   : > { %2190 = vmatpush1.bf16.msra.mxu0 %v6253_v35  ;;  %2272 = vmatpush1.bf16.msra.mxu1 %v6256_v36  ;;  %v6348_v35 = vld [vmem:[#allocation5 + $0x55c] ss:$48 sps:$4 sm:$0xff]   ;;  %v6343_v36 = vld [vmem:[#allocation5 + $0x550] ss:$48 sps:$4 sm:$0xff]  }
 0x101   : > { %2298 = vmatprep.subr.bf16.mxu0 %v6261_v38  ;;  %2380 = vmatprep.subr.bf16.mxu1 %v6264_v39  ;;  %v6351_v38 = vld [vmem:[#allocation5 + $0x5b4] ss:$48 sps:$4 sm:$0xff]   ;;  %v6354_v39 = vld [vmem:[#allocation5 + $0x5bc] ss:$48 sps:$4 sm:$0xff]  }
 0x103   : > { %2208 = vmatmul.mubr.bf16.vlgmr.msra.gmra.mrb[0].mxu0 %v7470_v40  ;;  %2290 = vmatmul.mubr.bf16.vlgmr.msra.gmra.mrb[0].mxu1 %v7470_v40 }
 0x104   : > { %2299 = vmatpush1.bf16.msra.mxu0 %v6259_v41  ;;  %2381 = vmatpush1.bf16.msra.mxu1 %v6262_v42  ;;  %v6349_v41 = vld [vmem:[#allocation5 + $0x5b0] ss:$48 sps:$4 sm:$0xff]   ;;  %v6352_v42 = vld [vmem:[#allocation5 + $0x5b8] ss:$48 sps:$4 sm:$0xff]  }
 0x105   : > { %2300 = vmatprep.subr.bf16.mxu0 %v6267_v43  ;;  %2382 = vmatprep.subr.bf16.mxu1 %v6270_v44  ;;  %v6357_v43 = vld [vmem:[#allocation5 + $0x614] ss:$48 sps:$4 sm:$0xff]   ;;  %v6360_v44 = vld [vmem:[#allocation5 + $0x61c] ss:$48 sps:$4 sm:$0xff]  }
 0x106   : > { %2330 = vmatprep.mubr.bf16.mxu0 %v7458_v48  ;;  %2412 = vmatprep.mubr.bf16.mxu1 %v7458_v48 }
 0x108   : > { %2301 = vmatpush1.bf16.msra.mxu0 %v6265_v45  ;;  %2383 = vmatpush1.bf16.msra.mxu1 %v6268_v46  ;;  %v6355_v45 = vld [vmem:[#allocation5 + $0x610] ss:$48 sps:$4 sm:$0xff]   ;;  %v6358_v46 = vld [vmem:[#allocation5 + $0x618] ss:$48 sps:$4 sm:$0xff]  }
 0x109   : > { %2302 = vmatprep.subr.bf16.mxu0 %v6273_v47  ;;  %2384 = vmatprep.subr.bf16.mxu1 %v6276_v49  ;;  %v6363_v47 = vld [vmem:[#allocation5 + $0x674] ss:$48 sps:$4 sm:$0xff]   ;;  %v6366_v49 = vld [vmem:[#allocation5 + $0x67c] ss:$48 sps:$4 sm:$0xff]  }
 0x10c   : > { %2303 = vmatpush1.bf16.msra.mxu0 %v6271_v50  ;;  %2385 = vmatpush1.bf16.msra.mxu1 %v6274_v51  ;;  %v6361_v50 = vld [vmem:[#allocation5 + $0x670] ss:$48 sps:$4 sm:$0xff]   ;;  %v6364_v51 = vld [vmem:[#allocation5 + $0x678] ss:$48 sps:$4 sm:$0xff]  }
 0x10d   : > { %2304 = vmatprep.subr.bf16.mxu0 %v6279_v52  ;;  %2386 = vmatprep.subr.bf16.mxu1 %v6282_v53  ;;  %v6369_v52 = vld [vmem:[#allocation5 + $0x6d4] ss:$48 sps:$4 sm:$0xff]   ;;  %v6372_v53 = vld [vmem:[#allocation5 + $0x6dc] ss:$48 sps:$4 sm:$0xff]  }
 0x110   : > { %2305 = vmatpush1.bf16.msra.mxu0 %v6277_v54  ;;  %2387 = vmatpush1.bf16.msra.mxu1 %v6280_v55  ;;  %v6367_v54 = vld [vmem:[#allocation5 + $0x6d0] ss:$48 sps:$4 sm:$0xff]   ;;  %v6370_v55 = vld [vmem:[#allocation5 + $0x6d8] ss:$48 sps:$4 sm:$0xff]  }
 0x111   : > { %2306 = vmatprep.subr.bf16.mxu0 %v6285_v56  ;;  %2388 = vmatprep.subr.bf16.mxu1 %v6288_v57  ;;  %v6375_v56 = vld [vmem:[#allocation5 + $0x734] ss:$48 sps:$4 sm:$0xff]   ;;  %v6378_v57 = vld [vmem:[#allocation5 + $0x73c] ss:$48 sps:$4 sm:$0xff]  }
 0x114   : > { %2307 = vmatpush1.bf16.msra.mxu0 %v6283_v58  ;;  %2389 = vmatpush1.bf16.msra.mxu1 %v6286_v59  ;;  %v6373_v58 = vld [vmem:[#allocation5 + $0x730] ss:$48 sps:$4 sm:$0xff]   ;;  %v6376_v59 = vld [vmem:[#allocation5 + $0x738] ss:$48 sps:$4 sm:$0xff]  }
 0x115   : > { %2308 = vmatprep.subr.bf16.mxu0 %v6291_v60  ;;  %2390 = vmatprep.subr.bf16.mxu1 %v6294_v61  ;;  %v6381_v60 = vld [vmem:[#allocation5 + $0x794] ss:$48 sps:$4 sm:$0xff]   ;;  %v6384_v61 = vld [vmem:[#allocation5 + $0x79c] ss:$48 sps:$4 sm:$0xff]  }
 0x118   : > { %2309 = vmatpush1.bf16.msra.mxu0 %v6289_v62  ;;  %2391 = vmatpush1.bf16.msra.mxu1 %v6292_v63  ;;  %v6379_v62 = vld [vmem:[#allocation5 + $0x790] ss:$48 sps:$4 sm:$0xff]   ;;  %v6382_v63 = vld [vmem:[#allocation5 + $0x798] ss:$48 sps:$4 sm:$0xff]  }
 0x119   : > { %2310 = vmatprep.subr.bf16.mxu0 %v6297_v0  ;;  %2392 = vmatprep.subr.bf16.mxu1 %v6300_v1  ;;  %v6387_v0 = vld [vmem:[#allocation5 + $0x7f4] ss:$48 sps:$4 sm:$0xff]   ;;  %v6390_v1 = vld [vmem:[#allocation5 + $0x7fc] ss:$48 sps:$4 sm:$0xff]  }
 0x11c   : > { %2311 = vmatpush1.bf16.msra.mxu0 %v6295_v2  ;;  %2393 = vmatpush1.bf16.msra.mxu1 %v6298_v3  ;;  %v6385_v2 = vld [vmem:[#allocation5 + $0x7f0] ss:$48 sps:$4 sm:$0xff]   ;;  %v6388_v3 = vld [vmem:[#allocation5 + $0x7f8] ss:$48 sps:$4 sm:$0xff]  }
 0x11d   : > { %2312 = vmatprep.subr.bf16.mxu0 %v6303_v4  ;;  %2394 = vmatprep.subr.bf16.mxu1 %v6306_v6  ;;  %v6393_v4 = vld [vmem:[#allocation5 + $0x854] ss:$48 sps:$4 sm:$0xff]   ;;  %v6396_v6 = vld [vmem:[#allocation5 + $0x85c] ss:$48 sps:$4 sm:$0xff]  }
 0x120   : > { %2313 = vmatpush1.bf16.msra.mxu0 %v6301_v7  ;;  %2395 = vmatpush1.bf16.msra.mxu1 %v6304_v8  ;;  %v6391_v7 = vld [vmem:[#allocation5 + $0x850] ss:$48 sps:$4 sm:$0xff]   ;;  %v6394_v8 = vld [vmem:[#allocation5 + $0x858] ss:$48 sps:$4 sm:$0xff]  }
 0x121   : > { %2314 = vmatprep.subr.bf16.mxu0 %v6309_v9  ;;  %2396 = vmatprep.subr.bf16.mxu1 %v6312_v10  ;;  %v6399_v9 = vld [vmem:[#allocation5 + $0x8b4] ss:$48 sps:$4 sm:$0xff]   ;;  %v6402_v10 = vld [vmem:[#allocation5 + $0x8bc] ss:$48 sps:$4 sm:$0xff]  }
 0x124   : > { %2315 = vmatpush1.bf16.msra.mxu0 %v6307_v11  ;;  %2397 = vmatpush1.bf16.msra.mxu1 %v6310_v12  ;;  %v6397_v11 = vld [vmem:[#allocation5 + $0x8b0] ss:$48 sps:$4 sm:$0xff]   ;;  %v6400_v12 = vld [vmem:[#allocation5 + $0x8b8] ss:$48 sps:$4 sm:$0xff]  }
 0x125   : > { %2316 = vmatprep.subr.bf16.mxu0 %v6315_v13  ;;  %2398 = vmatprep.subr.bf16.mxu1 %v6318_v15  ;;  %v6405_v13 = vld [vmem:[#allocation5 + $0x24] ss:$48 sps:$4 sm:$0xff]   ;;  %v6408_v15 = vld [vmem:[#allocation5 + $0x2c] ss:$48 sps:$4 sm:$0xff]  }
 0x128   : > { %2317 = vmatpush1.bf16.msra.mxu0 %v6313_v16  ;;  %2399 = vmatpush1.bf16.msra.mxu1 %v6316_v17  ;;  %v6403_v16 = vld [vmem:[#allocation5 + $0x20] ss:$48 sps:$4 sm:$0xff]   ;;  %v6406_v17 = vld [vmem:[#allocation5 + $0x28] ss:$48 sps:$4 sm:$0xff]  }
 0x129   : > { %2318 = vmatprep.subr.bf16.mxu0 %v6321_v18  ;;  %2400 = vmatprep.subr.bf16.mxu1 %v6324_v19  ;;  %v6411_v18 = vld [vmem:[#allocation5 + $0x84] ss:$48 sps:$4 sm:$0xff]   ;;  %v6414_v19 = vld [vmem:[#allocation5 + $0x8c] ss:$48 sps:$4 sm:$0xff]  }
 0x12c   : > { %2319 = vmatpush1.bf16.msra.mxu0 %v6319_v20  ;;  %2401 = vmatpush1.bf16.msra.mxu1 %v6322_v21  ;;  %v6409_v20 = vld [vmem:[#allocation5 + $0x80] ss:$48 sps:$4 sm:$0xff]   ;;  %v6412_v21 = vld [vmem:[#allocation5 + $0x88] ss:$48 sps:$4 sm:$0xff]  }
 0x12d   : > { %2320 = vmatprep.subr.bf16.mxu0 %v6327_v22  ;;  %2402 = vmatprep.subr.bf16.mxu1 %v6330_v23  ;;  %v6417_v22 = vld [vmem:[#allocation5 + $0xe4] ss:$48 sps:$4 sm:$0xff]   ;;  %v6420_v23 = vld [vmem:[#allocation5 + $0xec] ss:$48 sps:$4 sm:$0xff]  }
 0x130   : > { %2321 = vmatpush1.bf16.msra.mxu0 %v6325_v24  ;;  %2403 = vmatpush1.bf16.msra.mxu1 %v6328_v25  ;;  %v6415_v24 = vld [vmem:[#allocation5 + $0xe0] ss:$48 sps:$4 sm:$0xff]   ;;  %v6418_v25 = vld [vmem:[#allocation5 + $0xe8] ss:$48 sps:$4 sm:$0xff]  }
 0x131   : > { %2322 = vmatprep.subr.bf16.mxu0 %v6333_v26  ;;  %2404 = vmatprep.subr.bf16.mxu1 %v6336_v27  ;;  %v6423_v26 = vld [vmem:[#allocation5 + $0x144] ss:$48 sps:$4 sm:$0xff]   ;;  %v6426_v27 = vld [vmem:[#allocation5 + $0x14c] ss:$48 sps:$4 sm:$0xff]  }
 0x134   : > { %2323 = vmatpush1.bf16.msra.mxu0 %v6331_v28  ;;  %2405 = vmatpush1.bf16.msra.mxu1 %v6334_v29  ;;  %v6421_v28 = vld [vmem:[#allocation5 + $0x140] ss:$48 sps:$4 sm:$0xff]   ;;  %v6424_v29 = vld [vmem:[#allocation5 + $0x148] ss:$48 sps:$4 sm:$0xff]  }
 0x135   : > { %2324 = vmatprep.subr.bf16.mxu0 %v6339_v30  ;;  %2406 = vmatprep.subr.bf16.mxu1 %v6342_v31  ;;  %v6429_v30 = vld [vmem:[#allocation5 + $0x1a4] ss:$48 sps:$4 sm:$0xff]   ;;  %v6432_v31 = vld [vmem:[#allocation5 + $0x1ac] ss:$48 sps:$4 sm:$0xff]  }
 0x138   : > { %2325 = vmatpush1.bf16.msra.mxu0 %v6337_v32  ;;  %2407 = vmatpush1.bf16.msra.mxu1 %v6340_v33  ;;  %v6427_v32 = vld [vmem:[#allocation5 + $0x1a0] ss:$48 sps:$4 sm:$0xff]   ;;  %v6435_v33 = vld [vmem:[#allocation5 + $0x204] ss:$48 sps:$4 sm:$0xff]  }
 0x139   : > { %2326 = vmatprep.subr.bf16.mxu0 %v6345_v34  ;;  %2408 = vmatprep.subr.bf16.mxu1 %v6348_v35  ;;  %v6438_v34 = vld [vmem:[#allocation5 + $0x20c] ss:$48 sps:$4 sm:$0xff]   ;;  %v6433_v35 = vld [vmem:[#allocation5 + $0x200] ss:$48 sps:$4 sm:$0xff]  }
 0x13c   : > { %2327 = vmatpush1.bf16.msra.mxu0 %v6343_v36  ;;  %2409 = vmatpush1.bf16.msra.mxu1 %v6346_v37  ;;  %v6436_v36 = vld [vmem:[#allocation5 + $0x208] ss:$48 sps:$4 sm:$0xff]   ;;  %v6441_v37 = vld [vmem:[#allocation5 + $0x264] ss:$48 sps:$4 sm:$0xff]  }
 0x13d   : > { %2328 = vmatprep.subr.bf16.mxu0 %v6351_v38  ;;  %2410 = vmatprep.subr.bf16.mxu1 %v6354_v39  ;;  %v6444_v38 = vld [vmem:[#allocation5 + $0x26c] ss:$48 sps:$4 sm:$0xff]   ;;  %v6439_v39 = vld [vmem:[#allocation5 + $0x260] ss:$48 sps:$4 sm:$0xff]  }
 0x140   : > { %2329 = vmatpush1.bf16.msra.mxu0 %v6349_v41  ;;  %2411 = vmatpush1.bf16.msra.mxu1 %v6352_v42  ;;  %v6442_v41 = vld [vmem:[#allocation5 + $0x268] ss:$48 sps:$4 sm:$0xff]   ;;  %v6447_v42 = vld [vmem:[#allocation5 + $0x2c4] ss:$48 sps:$4 sm:$0xff]  }
 0x141   : > { %2339 = vmatprep.subr.bf16.mxu0 %v6357_v43  ;;  %2421 = vmatprep.subr.bf16.mxu1 %v6360_v44  ;;  %v6450_v43 = vld [vmem:[#allocation5 + $0x2cc] ss:$48 sps:$4 sm:$0xff]   ;;  %v6445_v44 = vld [vmem:[#allocation5 + $0x2c0] ss:$48 sps:$4 sm:$0xff]  }
 0x143   : > { %2331 = vmatmul.mubr.bf16.vlgmr.msra.gmra.mrb[4].mxu0 %v7463_v5  ;;  %2413 = vmatmul.mubr.bf16.vlgmr.msra.gmra.mrb[4].mxu1 %v7463_v5 }
 0x144   : > { %2340 = vmatpush1.bf16.msra.mxu0 %v6355_v45  ;;  %2422 = vmatpush1.bf16.msra.mxu1 %v6358_v46  ;;  %v6448_v45 = vld [vmem:[#allocation5 + $0x2c8] ss:$48 sps:$4 sm:$0xff]   ;;  %v6453_v46 = vld [vmem:[#allocation5 + $0x324] ss:$48 sps:$4 sm:$0xff]  }
 0x145   : > { %2341 = vmatprep.subr.bf16.mxu0 %v6363_v47  ;;  %2423 = vmatprep.subr.bf16.mxu1 %v6366_v49  ;;  %v6456_v47 = vld [vmem:[#allocation5 + $0x32c] ss:$48 sps:$4 sm:$0xff]   ;;  %v6451_v49 = vld [vmem:[#allocation5 + $0x320] ss:$48 sps:$4 sm:$0xff]  }
 0x146   : > { %2371 = vmatprep.mubr.bf16.mxu0 %v7174_v14  ;;  %2453 = vmatprep.mubr.bf16.mxu1 %v7174_v14 }
 0x148   : > { %2342 = vmatpush1.bf16.msra.mxu0 %v6361_v50  ;;  %2424 = vmatpush1.bf16.msra.mxu1 %v6364_v51  ;;  %v6454_v50 = vld [vmem:[#allocation5 + $0x328] ss:$48 sps:$4 sm:$0xff]   ;;  %v6459_v51 = vld [vmem:[#allocation5 + $0x384] ss:$48 sps:$4 sm:$0xff]  }
 0x149   : > { %2343 = vmatprep.subr.bf16.mxu0 %v6369_v52  ;;  %2425 = vmatprep.subr.bf16.mxu1 %v6372_v53  ;;  %v6462_v52 = vld [vmem:[#allocation5 + $0x38c] ss:$48 sps:$4 sm:$0xff]   ;;  %v6457_v53 = vld [vmem:[#allocation5 + $0x380] ss:$48 sps:$4 sm:$0xff]  }
 0x14c   : > { %2344 = vmatpush1.bf16.msra.mxu0 %v6367_v54  ;;  %2426 = vmatpush1.bf16.msra.mxu1 %v6370_v55  ;;  %v6460_v54 = vld [vmem:[#allocation5 + $0x388] ss:$48 sps:$4 sm:$0xff]   ;;  %v6465_v55 = vld [vmem:[#allocation5 + $0x3e4] ss:$48 sps:$4 sm:$0xff]  }
 0x14d   : > { %2345 = vmatprep.subr.bf16.mxu0 %v6375_v56  ;;  %2427 = vmatprep.subr.bf16.mxu1 %v6378_v57  ;;  %v6468_v56 = vld [vmem:[#allocation5 + $0x3ec] ss:$48 sps:$4 sm:$0xff]   ;;  %v6463_v57 = vld [vmem:[#allocation5 + $0x3e0] ss:$48 sps:$4 sm:$0xff]  }
 0x150   : > { %2346 = vmatpush1.bf16.msra.mxu0 %v6373_v58  ;;  %2428 = vmatpush1.bf16.msra.mxu1 %v6376_v59  ;;  %v6466_v58 = vld [vmem:[#allocation5 + $0x3e8] ss:$48 sps:$4 sm:$0xff]   ;;  %v6471_v59 = vld [vmem:[#allocation5 + $0x444] ss:$48 sps:$4 sm:$0xff]  }
 0x151   : > { %2347 = vmatprep.subr.bf16.mxu0 %v6381_v60  ;;  %2429 = vmatprep.subr.bf16.mxu1 %v6384_v61  ;;  %v6474_v60 = vld [vmem:[#allocation5 + $0x44c] ss:$48 sps:$4 sm:$0xff]   ;;  %v6469_v61 = vld [vmem:[#allocation5 + $0x440] ss:$48 sps:$4 sm:$0xff]  }
 0x154   : > { %2348 = vmatpush1.bf16.msra.mxu0 %v6379_v62  ;;  %2430 = vmatpush1.bf16.msra.mxu1 %v6382_v63  ;;  %v6472_v62 = vld [vmem:[#allocation5 + $0x448] ss:$48 sps:$4 sm:$0xff]   ;;  %v6477_v63 = vld [vmem:[#allocation5 + $0x4a4] ss:$48 sps:$4 sm:$0xff]  }
 0x155   : > { %2349 = vmatprep.subr.bf16.mxu0 %v6387_v0  ;;  %2431 = vmatprep.subr.bf16.mxu1 %v6390_v1  ;;  %v6480_v0 = vld [vmem:[#allocation5 + $0x4ac] ss:$48 sps:$4 sm:$0xff]   ;;  %v6475_v1 = vld [vmem:[#allocation5 + $0x4a0] ss:$48 sps:$4 sm:$0xff]  }
 0x158   : > { %2350 = vmatpush1.bf16.msra.mxu0 %v6385_v2  ;;  %2432 = vmatpush1.bf16.msra.mxu1 %v6388_v3  ;;  %v6478_v2 = vld [vmem:[#allocation5 + $0x4a8] ss:$48 sps:$4 sm:$0xff]   ;;  %v6483_v3 = vld [vmem:[#allocation5 + $0x504] ss:$48 sps:$4 sm:$0xff]  }
 0x159   : > { %2351 = vmatprep.subr.bf16.mxu0 %v6393_v4  ;;  %2433 = vmatprep.subr.bf16.mxu1 %v6396_v6  ;;  %v6486_v4 = vld [vmem:[#allocation5 + $0x50c] ss:$48 sps:$4 sm:$0xff]   ;;  %v6481_v6 = vld [vmem:[#allocation5 + $0x500] ss:$48 sps:$4 sm:$0xff]  }
 0x15c   : > { %2352 = vmatpush1.bf16.msra.mxu0 %v6391_v7  ;;  %2434 = vmatpush1.bf16.msra.mxu1 %v6394_v8  ;;  %v6484_v7 = vld [vmem:[#allocation5 + $0x508] ss:$48 sps:$4 sm:$0xff]   ;;  %v6489_v8 = vld [vmem:[#allocation5 + $0x564] ss:$48 sps:$4 sm:$0xff]  }
 0x15d   : > { %2353 = vmatprep.subr.bf16.mxu0 %v6399_v9  ;;  %2435 = vmatprep.subr.bf16.mxu1 %v6402_v10  ;;  %v6492_v9 = vld [vmem:[#allocation5 + $0x56c] ss:$48 sps:$4 sm:$0xff]   ;;  %v6487_v10 = vld [vmem:[#allocation5 + $0x560] ss:$48 sps:$4 sm:$0xff]  }
 0x160   : > { %2354 = vmatpush1.bf16.msra.mxu0 %v6397_v11  ;;  %2436 = vmatpush1.bf16.msra.mxu1 %v6400_v12  ;;  %v6490_v11 = vld [vmem:[#allocation5 + $0x568] ss:$48 sps:$4 sm:$0xff]   ;;  %v6495_v12 = vld [vmem:[#allocation5 + $0x5c4] ss:$48 sps:$4 sm:$0xff]  }
 0x161   : > { %2462 = vmatprep.subr.bf16.mxu0 %v6405_v13  ;;  %2544 = vmatprep.subr.bf16.mxu1 %v6408_v15  ;;  %v6498_v13 = vld [vmem:[#allocation5 + $0x5cc] ss:$48 sps:$4 sm:$0xff]   ;;  %v6493_v15 = vld [vmem:[#allocation5 + $0x5c0] ss:$48 sps:$4 sm:$0xff]  }
 0x163   : > { %2372 = vmatmul.mubr.bf16.vlgmr.msra.gmra.mrb[4].mxu0 %v7470_v40  ;;  %2454 = vmatmul.mubr.bf16.vlgmr.msra.gmra.mrb[4].mxu1 %v7470_v40 }
 0x164   : > { %2463 = vmatpush1.bf16.msra.mxu0 %v6403_v16  ;;  %2545 = vmatpush1.bf16.msra.mxu1 %v6406_v17  ;;  %v6496_v16 = vld [vmem:[#allocation5 + $0x5c8] ss:$48 sps:$4 sm:$0xff]   ;;  %v6501_v17 = vld [vmem:[#allocation5 + $0x624] ss:$48 sps:$4 sm:$0xff]  }
 0x165   : > { %2464 = vmatprep.subr.bf16.mxu0 %v6411_v18  ;;  %2546 = vmatprep.subr.bf16.mxu1 %v6414_v19  ;;  %v6504_v18 = vld [vmem:[#allocation5 + $0x62c] ss:$48 sps:$4 sm:$0xff]   ;;  %v6499_v19 = vld [vmem:[#allocation5 + $0x620] ss:$48 sps:$4 sm:$0xff]  }
 0x166   : > { %2494 = vmatprep.mubr.bf16.mxu0 %v7458_v48  ;;  %2576 = vmatprep.mubr.bf16.mxu1 %v7458_v48  ;;  %v6430_v48 = vld [vmem:[#allocation5 + $0x1a8] ss:$48 sps:$4 sm:$0xff]  }
 0x168   : > { %2465 = vmatpush1.bf16.msra.mxu0 %v6409_v20  ;;  %2547 = vmatpush1.bf16.msra.mxu1 %v6412_v21  ;;  %v6502_v20 = vld [vmem:[#allocation5 + $0x628] ss:$48 sps:$4 sm:$0xff]   ;;  %v6507_v21 = vld [vmem:[#allocation5 + $0x684] ss:$48 sps:$4 sm:$0xff]  }
 0x169   : > { %2466 = vmatprep.subr.bf16.mxu0 %v6417_v22  ;;  %2548 = vmatprep.subr.bf16.mxu1 %v6420_v23  ;;  %v6510_v22 = vld [vmem:[#allocation5 + $0x68c] ss:$48 sps:$4 sm:$0xff]   ;;  %v6505_v23 = vld [vmem:[#allocation5 + $0x680] ss:$48 sps:$4 sm:$0xff]  }
 0x16c   : > { %2467 = vmatpush1.bf16.msra.mxu0 %v6415_v24  ;;  %2549 = vmatpush1.bf16.msra.mxu1 %v6418_v25  ;;  %v6508_v24 = vld [vmem:[#allocation5 + $0x688] ss:$48 sps:$4 sm:$0xff]   ;;  %v6513_v25 = vld [vmem:[#allocation5 + $0x6e4] ss:$48 sps:$4 sm:$0xff]  }
 0x16d   : > { %2468 = vmatprep.subr.bf16.mxu0 %v6423_v26  ;;  %2550 = vmatprep.subr.bf16.mxu1 %v6426_v27  ;;  %v6516_v26 = vld [vmem:[#allocation5 + $0x6ec] ss:$48 sps:$4 sm:$0xff]   ;;  %v6511_v27 = vld [vmem:[#allocation5 + $0x6e0] ss:$48 sps:$4 sm:$0xff]  }
 0x170   : > { %2469 = vmatpush1.bf16.msra.mxu0 %v6421_v28  ;;  %2551 = vmatpush1.bf16.msra.mxu1 %v6424_v29  ;;  %v6514_v28 = vld [vmem:[#allocation5 + $0x6e8] ss:$48 sps:$4 sm:$0xff]   ;;  %v6519_v29 = vld [vmem:[#allocation5 + $0x744] ss:$48 sps:$4 sm:$0xff]  }
 0x171   : > { %2470 = vmatprep.subr.bf16.mxu0 %v6429_v30  ;;  %2552 = vmatprep.subr.bf16.mxu1 %v6432_v31  ;;  %v6517_v30 = vld [vmem:[#allocation5 + $0x740] ss:$48 sps:$4 sm:$0xff]   ;;  %v6520_v31 = vld [vmem:[#allocation5 + $0x748] ss:$48 sps:$4 sm:$0xff]  }
 0x174   : > { %2471 = vmatpush1.bf16.msra.mxu0 %v6427_v32  ;;  %2553 = vmatpush1.bf16.msra.mxu1 %v6430_v48  ;;  %v6525_v32 = vld [vmem:[#allocation5 + $0x7a4] ss:$48 sps:$4 sm:$0xff]   ;;  %v6528_v48 = vld [vmem:[#allocation5 + $0x7ac] ss:$48 sps:$4 sm:$0xff]  }
 0x175   : > { %2472 = vmatprep.subr.bf16.mxu0 %v6435_v33  ;;  %2554 = vmatprep.subr.bf16.mxu1 %v6438_v34  ;;  %v6523_v33 = vld [vmem:[#allocation5 + $0x7a0] ss:$48 sps:$4 sm:$0xff]   ;;  %v6531_v34 = vld [vmem:[#allocation5 + $0x804] ss:$48 sps:$4 sm:$0xff]  }
 0x178   : > { %2473 = vmatpush1.bf16.msra.mxu0 %v6433_v35  ;;  %2555 = vmatpush1.bf16.msra.mxu1 %v6436_v36  ;;  %v6534_v35 = vld [vmem:[#allocation5 + $0x80c] ss:$48 sps:$4 sm:$0xff]   ;;  %v6529_v36 = vld [vmem:[#allocation5 + $0x800] ss:$48 sps:$4 sm:$0xff]  }
 0x179   : > { %2474 = vmatprep.subr.bf16.mxu0 %v6441_v37  ;;  %2556 = vmatprep.subr.bf16.mxu1 %v6444_v38  ;;  %v6532_v37 = vld [vmem:[#allocation5 + $0x808] ss:$48 sps:$4 sm:$0xff]   ;;  %v6537_v38 = vld [vmem:[#allocation5 + $0x864] ss:$48 sps:$4 sm:$0xff]  }
 0x17c   : > { %2475 = vmatpush1.bf16.msra.mxu0 %v6439_v39  ;;  %2557 = vmatpush1.bf16.msra.mxu1 %v6442_v41  ;;  %v6540_v39 = vld [vmem:[#allocation5 + $0x86c] ss:$48 sps:$4 sm:$0xff]   ;;  %v6535_v41 = vld [vmem:[#allocation5 + $0x860] ss:$48 sps:$4 sm:$0xff]  }
 0x17d   : > { %2476 = vmatprep.subr.bf16.mxu0 %v6447_v42  ;;  %2558 = vmatprep.subr.bf16.mxu1 %v6450_v43  ;;  %v6538_v42 = vld [vmem:[#allocation5 + $0x868] ss:$48 sps:$4 sm:$0xff]   ;;  %v6543_v43 = vld [vmem:[#allocation5 + $0x8c4] ss:$48 sps:$4 sm:$0xff]  }
 0x180   : > { %2477 = vmatpush1.bf16.msra.mxu0 %v6445_v44  ;;  %2559 = vmatpush1.bf16.msra.mxu1 %v6448_v45  ;;  %v6546_v44 = vld [vmem:[#allocation5 + $0x8cc] ss:$48 sps:$4 sm:$0xff]   ;;  %v6541_v45 = vld [vmem:[#allocation5 + $0x8c0] ss:$48 sps:$4 sm:$0xff]  }
 0x181   : > { %2478 = vmatprep.subr.bf16.mxu0 %v6453_v46  ;;  %2560 = vmatprep.subr.bf16.mxu1 %v6456_v47  ;;  %v6544_v46 = vld [vmem:[#allocation5 + $0x8c8] ss:$48 sps:$4 sm:$0xff]   ;;  %v6549_v47 = vld [vmem:[#allocation8 + $0x4] ss:$12 sps:$4 sm:$0xff]  }
 0x184   : > { %2479 = vmatpush1.bf16.msra.mxu0 %v6451_v49  ;;  %2561 = vmatpush1.bf16.msra.mxu1 %v6454_v50  ;;  %v6552_v49 = vld [vmem:[#allocation8 + $0x184] ss:$12 sps:$4 sm:$0xff]   ;;  %v6547_v50 = vld [vmem:[#allocation8] ss:$12 sps:$4 sm:$0xff]  }
 0x185   : > { %2480 = vmatprep.subr.bf16.mxu0 %v6459_v51  ;;  %2562 = vmatprep.subr.bf16.mxu1 %v6462_v52  ;;  %v6550_v51 = vld [vmem:[#allocation8 + $0x180] ss:$12 sps:$4 sm:$0xff]   ;;  %v6555_v52 = vld [vmem:[#allocation8 + $0x1c] ss:$12 sps:$4 sm:$0xff]  }
 0x188   : > { %2481 = vmatpush1.bf16.msra.mxu0 %v6457_v53  ;;  %2563 = vmatpush1.bf16.msra.mxu1 %v6460_v54  ;;  %v6558_v53 = vld [vmem:[#allocation8 + $0x19c] ss:$12 sps:$4 sm:$0xff]   ;;  %v6553_v54 = vld [vmem:[#allocation8 + $0x18] ss:$12 sps:$4 sm:$0xff]  }
 0x189   : > { %2482 = vmatprep.subr.bf16.mxu0 %v6465_v55  ;;  %2564 = vmatprep.subr.bf16.mxu1 %v6468_v56  ;;  %v6556_v55 = vld [vmem:[#allocation8 + $0x198] ss:$12 sps:$4 sm:$0xff]   ;;  %v6561_v56 = vld [vmem:[#allocation8 + $0x34] ss:$12 sps:$4 sm:$0xff]  }
 0x18c   : > { %2483 = vmatpush1.bf16.msra.mxu0 %v6463_v57  ;;  %2565 = vmatpush1.bf16.msra.mxu1 %v6466_v58  ;;  %v6564_v57 = vld [vmem:[#allocation8 + $0x1b4] ss:$12 sps:$4 sm:$0xff]   ;;  %v6559_v58 = vld [vmem:[#allocation8 + $0x30] ss:$12 sps:$4 sm:$0xff]  }
 0x18d   : > { %2484 = vmatprep.subr.bf16.mxu0 %v6471_v59  ;;  %2566 = vmatprep.subr.bf16.mxu1 %v6474_v60  ;;  %v6562_v59 = vld [vmem:[#allocation8 + $0x1b0] ss:$12 sps:$4 sm:$0xff]   ;;  %v634_v60 = vlaneseq }
 0x190   : > { %2485 = vmatpush1.bf16.msra.mxu0 %v6469_v61  ;;  %2567 = vmatpush1.bf16.msra.mxu1 %v6472_v62  ;;  %v6567_v61 = vld [vmem:[#allocation8 + $0x4c] ss:$12 sps:$4 sm:$0xff]  }
 0x191   : > { %2486 = vmatprep.subr.bf16.mxu0 %v6477_v63  ;;  %2568 = vmatprep.subr.bf16.mxu1 %v6480_v0  ;;  %v6570_v62 = vld [vmem:[#allocation8 + $0x1cc] ss:$12 sps:$4 sm:$0xff]   ;;  %v6568_v63 = vld [vmem:[#allocation8 + $0x1c8] ss:$12 sps:$4 sm:$0xff]   ;;  %v7490_v0 = vshrl.u32 %v634_v60, 7 }
 0x192   : > { %v6622_v60 = vld [vmem:[#allocation8 + $0x2a0] ss:$12 sps:$4 sm:$0xff]  }
 0x194   : > { %2487 = vmatpush1.bf16.msra.mxu0 %v6475_v1  ;;  %2569 = vmatpush1.bf16.msra.mxu1 %v6478_v2  ;;  %v6573_v1 = vld [vmem:[#allocation8 + $0x64] ss:$12 sps:$4 sm:$0xff]  }
 0x195   : > { %2488 = vmatprep.subr.bf16.mxu0 %v6483_v3  ;;  %2570 = vmatprep.subr.bf16.mxu1 %v6486_v4  ;;  %v6576_v2 = vld [vmem:[#allocation8 + $0x1e4] ss:$12 sps:$4 sm:$0xff]   ;;  %v6571_v3 = vld [vmem:[#allocation8 + $0x60] ss:$12 sps:$4 sm:$0xff]  }
 0x196   : > { %v6574_v4 = vld [vmem:[#allocation8 + $0x1e0] ss:$12 sps:$4 sm:$0xff]  }
 0x198   : > { %2489 = vmatpush1.bf16.msra.mxu0 %v6481_v6  ;;  %2571 = vmatpush1.bf16.msra.mxu1 %v6484_v7  ;;  %v7492_v6 = vld [vmem:[#allocation7] sm:$0xff]  ;;  %v7495_v7 = vsub.s32 1, %v7490_v0 }
 0x199   : > { %2490 = vmatprep.subr.bf16.mxu0 %v6489_v8  ;;  %2572 = vmatprep.subr.bf16.mxu1 %v6492_v9  ;;  %v648_v8 = vsub.s32 3, %v7490_v0  ;;  %v6579_v9 = vld [vmem:[#allocation8 + $0x7c] ss:$12 sps:$4 sm:$0xff]  }
 0x19c   : > { %2491 = vmatpush1.bf16.msra.mxu0 %v6487_v10  ;;  %2573 = vmatpush1.bf16.msra.mxu1 %v6490_v11  ;;  %v6582_v10 = vld [vmem:[#allocation8 + $0x1fc] ss:$12 sps:$4 sm:$0xff]   ;;  %v641_v11 = vrot.slane %v7492_v6, %v7495_v7 }
 0x19d   : > { %2492 = vmatprep.subr.bf16.mxu0 %v6495_v12  ;;  %2574 = vmatprep.subr.bf16.mxu1 %v6498_v13  ;;  %v649_v12 = vrot.slane %v7492_v6, %v648_v8  ;;  %v6577_v13 = vld [vmem:[#allocation8 + $0x78] ss:$12 sps:$4 sm:$0xff]  }
 0x1a0   : > { %2493 = vmatpush1.bf16.msra.mxu0 %v6493_v15  ;;  %2575 = vmatpush1.bf16.msra.mxu1 %v6496_v16  ;;  %v6580_v15 = vld [vmem:[#allocation8 + $0x1f8] ss:$12 sps:$4 sm:$0xff]   ;;  %v6585_v16 = vld [vmem:[#allocation8 + $0x94] ss:$12 sps:$4 sm:$0xff]  }
 0x1a1   : > { %2503 = vmatprep.subr.bf16.mxu0 %v6501_v17  ;;  %2585 = vmatprep.subr.bf16.mxu1 %v6504_v18  ;;  %v6588_v17 = vld [vmem:[#allocation8 + $0x214] ss:$12 sps:$4 sm:$0xff]  }
 0x1a3   : > { %2495 = vmatmul.mubr.bf16.vlgmr.msra.gmra.mrb[8].mxu0 %v7463_v5  ;;  %2577 = vmatmul.mubr.bf16.vlgmr.msra.gmra.mrb[8].mxu1 %v7463_v5  ;;  %v6522_v5 = vld [vmem:[#allocation5 + $0x74c] ss:$48 sps:$4 sm:$0xff]  }
 0x1a4   : > { %2504 = vmatpush1.bf16.msra.mxu0 %v6499_v19  ;;  %2586 = vmatpush1.bf16.msra.mxu1 %v6502_v20 }
 0x1a5   : > { %2505 = vmatprep.subr.bf16.mxu0 %v6507_v21  ;;  %2587 = vmatprep.subr.bf16.mxu1 %v6510_v22 }
 0x1a6   : > { %2535 = vmatprep.mubr.bf16.mxu0 %v7174_v14  ;;  %2617 = vmatprep.mubr.bf16.mxu1 %v7174_v14  ;;  %v6526_v14 = vld [vmem:[#allocation5 + $0x7a8] ss:$48 sps:$4 sm:$0xff]  }
 0x1a8   : > { %2506 = vmatpush1.bf16.msra.mxu0 %v6505_v23  ;;  %2588 = vmatpush1.bf16.msra.mxu1 %v6508_v24 }
 0x1a9   : > { %2507 = vmatprep.subr.bf16.mxu0 %v6513_v25  ;;  %2589 = vmatprep.subr.bf16.mxu1 %v6516_v26  ;;  %v6583_v26 = vld [vmem:[#allocation8 + $0x90] ss:$12 sps:$4 sm:$0xff]  }
 0x1ac   : > { %2508 = vmatpush1.bf16.msra.mxu0 %v6511_v27  ;;  %2590 = vmatpush1.bf16.msra.mxu1 %v6514_v28  ;;  %v6586_v27 = vld [vmem:[#allocation8 + $0x210] ss:$12 sps:$4 sm:$0xff]  }
 0x1ad   : > { %2509 = vmatprep.subr.bf16.mxu0 %v6519_v29  ;;  %2591 = vmatprep.subr.bf16.mxu1 %v6522_v5  ;;  %v6591_v5 = vld [vmem:[#allocation8 + $0xac] ss:$12 sps:$4 sm:$0xff]  }
 0x1b0   : > { %2510 = vmatpush1.bf16.msra.mxu0 %v6517_v30  ;;  %2592 = vmatpush1.bf16.msra.mxu1 %v6520_v31  ;;  %v6594_v30 = vld [vmem:[#allocation8 + $0x22c] ss:$12 sps:$4 sm:$0xff]   ;;  %v7508_v31 = vsub.s32 0, %v7490_v0 }
 0x1b1   : > { %2511 = vmatprep.subr.bf16.mxu0 %v6525_v32  ;;  %2593 = vmatprep.subr.bf16.mxu1 %v6528_v48  ;;  %v7511_v32 = vsub.s32 2, %v7490_v0 }
 0x1b4   : > { %2512 = vmatpush1.bf16.msra.mxu0 %v6523_v33  ;;  %2594 = vmatpush1.bf16.msra.mxu1 %v6526_v14 }
 0x1b5   : > { %2513 = vmatprep.subr.bf16.mxu0 %v6531_v34  ;;  %2595 = vmatprep.subr.bf16.mxu1 %v6534_v35  ;;  %v6589_v35 = vld [vmem:[#allocation8 + $0xa8] ss:$12 sps:$4 sm:$0xff]  }
 0x1b8   : > { %2514 = vmatpush1.bf16.msra.mxu0 %v6529_v36  ;;  %2596 = vmatpush1.bf16.msra.mxu1 %v6532_v37  ;;  %v6592_v36 = vld [vmem:[#allocation8 + $0x228] ss:$12 sps:$4 sm:$0xff]   ;;  %v6597_v37 = vld [vmem:[#allocation8 + $0xc4] ss:$12 sps:$4 sm:$0xff]  }
 0x1b9   : > { %2515 = vmatprep.subr.bf16.mxu0 %v6537_v38  ;;  %2597 = vmatprep.subr.bf16.mxu1 %v6540_v39  ;;  %v6600_v38 = vld [vmem:[#allocation8 + $0x244] ss:$12 sps:$4 sm:$0xff]   ;;  %v6595_v39 = vld [vmem:[#allocation8 + $0xc0] ss:$12 sps:$4 sm:$0xff]  }
 0x1bc   : > { %2516 = vmatpush1.bf16.msra.mxu0 %v6535_v41  ;;  %2598 = vmatpush1.bf16.msra.mxu1 %v6538_v42  ;;  %v6598_v41 = vld [vmem:[#allocation8 + $0x240] ss:$12 sps:$4 sm:$0xff]   ;;  %v6603_v42 = vld [vmem:[#allocation8 + $0xdc] ss:$12 sps:$4 sm:$0xff]  }
 0x1bd   : > { %2517 = vmatprep.subr.bf16.mxu0 %v6543_v43  ;;  %2599 = vmatprep.subr.bf16.mxu1 %v6546_v44  ;;  %v6606_v43 = vld [vmem:[#allocation8 + $0x25c] ss:$12 sps:$4 sm:$0xff]   ;;  %v6601_v44 = vld [vmem:[#allocation8 + $0xd8] ss:$12 sps:$4 sm:$0xff]  }
 0x1c0   : > { %2518 = vmatpush1.bf16.msra.mxu0 %v6541_v45  ;;  %2600 = vmatpush1.bf16.msra.mxu1 %v6544_v46  ;;  %v6604_v45 = vld [vmem:[#allocation8 + $0x258] ss:$12 sps:$4 sm:$0xff]   ;;  %v6609_v46 = vld [vmem:[#allocation8 + $0xf4] ss:$12 sps:$4 sm:$0xff]  }
 0x1c1   : > { %4570 = vmatprep.subr.bf16.mxu0 %v6549_v47  ;;  %4611 = vmatprep.subr.bf16.mxu1 %v6552_v49  ;;  %v6612_v47 = vld [vmem:[#allocation8 + $0x274] ss:$12 sps:$4 sm:$0xff]   ;;  %v6607_v49 = vld [vmem:[#allocation8 + $0xf0] ss:$12 sps:$4 sm:$0xff]  }
 0x1c3   : > { %2536 = vmatmul.mubr.bf16.vlgmr.msra.gmra.mrb[8].mxu0 %v7470_v40  ;;  %2618 = vmatmul.mubr.bf16.vlgmr.msra.gmra.mrb[8].mxu1 %v7470_v40  ;;  %v6565_v40 = vld [vmem:[#allocation8 + $0x48] ss:$12 sps:$4 sm:$0xff]  }
 0x1c4   : > { %4571 = vmatpush1.bf16.msra.mxu0 %v6547_v50  ;;  %4612 = vmatpush1.bf16.msra.mxu1 %v6550_v51  ;;  %v6610_v50 = vld [vmem:[#allocation8 + $0x270] ss:$12 sps:$4 sm:$0xff]   ;;  %v6615_v51 = vld [vmem:[#allocation8 + $0x10c] ss:$12 sps:$4 sm:$0xff]  }
 0x1c5   : > { %4572 = vmatprep.subr.bf16.mxu0 %v6555_v52  ;;  %4613 = vmatprep.subr.bf16.mxu1 %v6558_v53  ;;  %v6618_v52 = vld [vmem:[#allocation8 + $0x28c] ss:$12 sps:$4 sm:$0xff]   ;;  %v6613_v53 = vld [vmem:[#allocation8 + $0x108] ss:$12 sps:$4 sm:$0xff]  }
 0x1c8   : > { %4573 = vmatpush1.bf16.msra.mxu0 %v6553_v54  ;;  %4614 = vmatpush1.bf16.msra.mxu1 %v6556_v55  ;;  %v6616_v54 = vld [vmem:[#allocation8 + $0x288] ss:$12 sps:$4 sm:$0xff]   ;;  %v6621_v55 = vld [vmem:[#allocation8 + $0x124] ss:$12 sps:$4 sm:$0xff]  }
 0x1c9   : > { %4574 = vmatprep.subr.bf16.mxu0 %v6561_v56  ;;  %4615 = vmatprep.subr.bf16.mxu1 %v6564_v57  ;;  %v6624_v56 = vld [vmem:[#allocation8 + $0x2a4] ss:$12 sps:$4 sm:$0xff]   ;;  %v637_v57 = vrot.slane %v7492_v6, %v7508_v31 }
 0x1cc   : > { %4575 = vmatpush1.bf16.msra.mxu0 %v6559_v58  ;;  %4616 = vmatpush1.bf16.msra.mxu1 %v6562_v59  ;;  %v645_v58 = vrot.slane %v7492_v6, %v7511_v32  ;;  %v6619_v59 = vld [vmem:[#allocation8 + $0x120] ss:$12 sps:$4 sm:$0xff]  }
 0x1cd   : > { %4576 = vmatprep.subr.bf16.mxu0 %v6567_v61  ;;  %4617 = vmatprep.subr.bf16.mxu1 %v6570_v62  ;;  %v6627_v61 = vld [vmem:[#allocation8 + $0x13c] ss:$12 sps:$4 sm:$0xff]  }
 0x1ce   : > { %v6630_v62 = vld [vmem:[#allocation8 + $0x2bc] ss:$12 sps:$4 sm:$0xff]  }
 0x1d0   : > { %4577 = vmatpush1.bf16.msra.mxu0 %v6565_v40  ;;  %4618 = vmatpush1.bf16.msra.mxu1 %v6568_v63 }
 0x1d1   : > { %4578 = vmatprep.subr.bf16.mxu0 %v6573_v1  ;;  %4619 = vmatprep.subr.bf16.mxu1 %v6576_v2  ;;  %v6625_v1 = vld [vmem:[#allocation8 + $0x138] ss:$12 sps:$4 sm:$0xff]  }
 0x1d2   : > { %v6628_v2 = vld [vmem:[#allocation8 + $0x2b8] ss:$12 sps:$4 sm:$0xff]  }
 0x1d4   : > { %4579 = vmatpush1.bf16.msra.mxu0 %v6571_v3  ;;  %4620 = vmatpush1.bf16.msra.mxu1 %v6574_v4  ;;  %v6633_v3 = vld [vmem:[#allocation8 + $0x154] ss:$12 sps:$4 sm:$0xff]  }
 0x1d5   : > { %4580 = vmatprep.subr.bf16.mxu0 %v6579_v9  ;;  %4621 = vmatprep.subr.bf16.mxu1 %v6582_v10  ;;  %v6636_v4 = vld [vmem:[#allocation8 + $0x2d4] ss:$12 sps:$4 sm:$0xff]   ;;  %v6631_v9 = vld [vmem:[#allocation8 + $0x150] ss:$12 sps:$4 sm:$0xff]  }
 0x1d6   : > { %v7503_v18 = vpop.f32.mrb[0].mxu0  ;;  %v7505_v19 = vpop.f32.mrb[0].mxu1  ;;  %v6634_v10 = vld [vmem:[#allocation8 + $0x2d0] ss:$12 sps:$4 sm:$0xff]  }
 0x1d7   : > { %v2211_v20 = vpop.f32.mrb[1].mxu0  ;;  %v2293_v21 = vpop.f32.mrb[1].mxu1  ;;  %v5967_v40 = vadd.f32 %v7503_v18, %v637_v57  ;;  %v5969_v63 = vadd.f32 %v7505_v19, %v645_v58  ;;  %v6645_v18 = vld [vmem:[#allocation8 + $0x304] ss:$12 sps:$4 sm:$0xff]   ;;  %v6691_v57 = vld [vmem:[#allocation8 + $0x3c0] ss:$12 sps:$4 sm:$0xff]  }
 0x1d8   : > { %v5968_v22 = vadd.f32 %v2211_v20, %v641_v11  ;;  %v5970_v23 = vadd.f32 %v2293_v21, %v649_v12  ;;  %v2213_v24 = vpop.f32.mrb[2].mxu0  ;;  %v2295_v25 = vpop.f32.mrb[2].mxu1  ;;  %4581 = vmatpush1.bf16.msra.mxu0 %v6577_v13  ;;  %4622 = vmatpush1.bf16.msra.mxu1 %v6580_v15  ;;  %v6639_v11 = vld [vmem:[#allocation8 + $0x16c] ss:$12 sps:$4 sm:$0xff]   ;;  %v6648_v19 = vld [vmem:[#allocation8 + $0x484] ss:$12 sps:$4 sm:$0xff]  }
 0x1d9   : > { %v2214_v28 = vpop.f32.mrb[3].mxu0  ;;  %v2296_v29 = vpop.f32.mrb[3].mxu1  ;;  %4582 = vmatprep.subr.bf16.mxu0 %v6585_v16  ;;  %4623 = vmatprep.subr.bf16.mxu1 %v6588_v17  ;;  %v6642_v12 = vld [vmem:[#allocation8 + $0x2ec] ss:$12 sps:$4 sm:$0xff]   ;;  %v2626_v13 = vmax.f32 %v5967_v40, 0.0  ;;  %v2628_v15 = vmax.f32 %v5969_v63, 0.0 }
 0x1da   : > { %v2627_v48 = vmax.f32 %v5968_v22, 0.0  ;;  %v2629_v33 = vmax.f32 %v5970_v23, 0.0  ;;  %v6637_v16 = vld [vmem:[#allocation8 + $0x168] ss:$12 sps:$4 sm:$0xff]   ;;  %v6643_v20 = vld [vmem:[#allocation8 + $0x300] ss:$12 sps:$4 sm:$0xff]  }
 0x1db   : > { %v6640_v17 = vld [vmem:[#allocation8 + $0x2e8] ss:$12 sps:$4 sm:$0xff]   ;;  %v6646_v21 = vld [vmem:[#allocation8 + $0x480] ss:$12 sps:$4 sm:$0xff]   ;;  %v7525_v24 = vpack.c.bf16 %v2626_v13, %v2626_v13  ;;  %v7527_v25 = vpack.c.bf16 %v2628_v15, %v2628_v15 }
 0x1dc   : > { %v7513_v14 = vpack.c.bf16 %v2627_v48, %v2627_v48  ;;  %v7515_v34 = vpack.c.bf16 %v2629_v33, %v2629_v33  ;;  %4583 = vmatpush1.bf16.msra.mxu0 %v6583_v26  ;;  %4624 = vmatpush1.bf16.msra.mxu1 %v6586_v27  ;;  %v6651_v22 = vld [vmem:[#allocation8 + $0x31c] ss:$12 sps:$4 sm:$0xff]   ;;  %v6649_v26 = vld [vmem:[#allocation8 + $0x318] ss:$12 sps:$4 sm:$0xff]   ;;  %v6657_v28 = vld [vmem:[#allocation8 + $0x334] ss:$12 sps:$4 sm:$0xff]  }
 0x1dd   : > { %4584 = vmatprep.subr.bf16.mxu0 %v6591_v5  ;;  %4625 = vmatprep.subr.bf16.mxu1 %v6594_v30  ;;  %v6654_v23 = vld [vmem:[#allocation8 + $0x49c] ss:$12 sps:$4 sm:$0xff]   ;;  %v6652_v27 = vld [vmem:[#allocation8 + $0x498] ss:$12 sps:$4 sm:$0xff]   ;;  %v6660_v29 = vld [vmem:[#allocation8 + $0x4b4] ss:$12 sps:$4 sm:$0xff]  }
 0x1de   : > { %4602 = vmatprep.mubr.bf16.mxu0 %v7513_v14  ;;  %4643 = vmatprep.mubr.bf16.mxu1 %v7515_v34  ;;  %v6655_v5 = vld [vmem:[#allocation8 + $0x330] ss:$12 sps:$4 sm:$0xff]   ;;  %v6663_v48 = vld [vmem:[#allocation8 + $0x34c] ss:$12 sps:$4 sm:$0xff]   ;;  %v6705_v40 = vld [vmem:[#allocation8 + $0x3f4] ss:$12 sps:$4 sm:$0xff]  }
 0x1df   : > { %v6658_v30 = vld [vmem:[#allocation8 + $0x4b0] ss:$12 sps:$4 sm:$0xff]   ;;  %v6666_v33 = vld [vmem:[#allocation8 + $0x4cc] ss:$12 sps:$4 sm:$0xff]   ;;  %v6708_v63 = vld [vmem:[#allocation8 + $0x574] ss:$12 sps:$4 sm:$0xff]  }
 0x1e0   : > { %4585 = vmatpush1.bf16.msra.mxu0 %v6589_v35  ;;  %4626 = vmatpush1.bf16.msra.mxu1 %v6592_v36  ;;  %v6661_v35 = vld [vmem:[#allocation8 + $0x348] ss:$12 sps:$4 sm:$0xff]   ;;  %v6694_v58 = vld [vmem:[#allocation8 + $0x540] ss:$12 sps:$4 sm:$0xff]  }
 0x1e1   : > { %4586 = vmatprep.subr.bf16.mxu0 %v6597_v37  ;;  %4627 = vmatprep.subr.bf16.mxu1 %v6600_v38  ;;  %v6664_v36 = vld [vmem:[#allocation8 + $0x4c8] ss:$12 sps:$4 sm:$0xff]   ;;  %v6669_v37 = vld [vmem:[#allocation8 + $0x364] ss:$12 sps:$4 sm:$0xff]   ;;  %v6715_v13 = vld [vmem:[#allocation8 + $0x420] ss:$12 sps:$4 sm:$0xff]  }
 0x1e2   : > { %v6672_v38 = vld [vmem:[#allocation8 + $0x4e4] ss:$12 sps:$4 sm:$0xff]   ;;  %v6718_v15 = vld [vmem:[#allocation8 + $0x5a0] ss:$12 sps:$4 sm:$0xff]  }
 0x1e4   : > { %4587 = vmatpush1.bf16.msra.mxu0 %v6595_v39  ;;  %4628 = vmatpush1.bf16.msra.mxu1 %v6598_v41  ;;  %v6667_v39 = vld [vmem:[#allocation8 + $0x360] ss:$12 sps:$4 sm:$0xff]  }
 0x1e5   : > { %4588 = vmatprep.subr.bf16.mxu0 %v6603_v42  ;;  %4629 = vmatprep.subr.bf16.mxu1 %v6606_v43  ;;  %v6670_v41 = vld [vmem:[#allocation8 + $0x4e0] ss:$12 sps:$4 sm:$0xff]   ;;  %v6675_v42 = vld [vmem:[#allocation8 + $0x37c] ss:$12 sps:$4 sm:$0xff]  }
 0x1e6   : > { %v6678_v43 = vld [vmem:[#allocation8 + $0x4fc] ss:$12 sps:$4 sm:$0xff]  }
 0x1e8   : > { %4589 = vmatpush1.bf16.msra.mxu0 %v6601_v44  ;;  %4630 = vmatpush1.bf16.msra.mxu1 %v6604_v45  ;;  %v6673_v44 = vld [vmem:[#allocation8 + $0x378] ss:$12 sps:$4 sm:$0xff]  }
 0x1e9   : > { %4590 = vmatprep.subr.bf16.mxu0 %v6609_v46  ;;  %4631 = vmatprep.subr.bf16.mxu1 %v6612_v47  ;;  %v6676_v45 = vld [vmem:[#allocation8 + $0x4f8] ss:$12 sps:$4 sm:$0xff]   ;;  %v6681_v46 = vld [vmem:[#allocation8 + $0x394] ss:$12 sps:$4 sm:$0xff]  }
 0x1ea   : > { %v6684_v47 = vld [vmem:[#allocation8 + $0x514] ss:$12 sps:$4 sm:$0xff]  }
 0x1ec   : > { %4591 = vmatpush1.bf16.msra.mxu0 %v6607_v49  ;;  %4632 = vmatpush1.bf16.msra.mxu1 %v6610_v50  ;;  %v6679_v49 = vld [vmem:[#allocation8 + $0x390] ss:$12 sps:$4 sm:$0xff]  }
 0x1ed   : > { %4592 = vmatprep.subr.bf16.mxu0 %v6615_v51  ;;  %4633 = vmatprep.subr.bf16.mxu1 %v6618_v52  ;;  %v6682_v50 = vld [vmem:[#allocation8 + $0x510] ss:$12 sps:$4 sm:$0xff]   ;;  %v6687_v51 = vld [vmem:[#allocation8 + $0x3ac] ss:$12 sps:$4 sm:$0xff]  }
 0x1ee   : > { %v6690_v52 = vld [vmem:[#allocation8 + $0x52c] ss:$12 sps:$4 sm:$0xff]  }
 0x1f0   : > { %4593 = vmatpush1.bf16.msra.mxu0 %v6613_v53  ;;  %4634 = vmatpush1.bf16.msra.mxu1 %v6616_v54  ;;  %v6685_v53 = vld [vmem:[#allocation8 + $0x3a8] ss:$12 sps:$4 sm:$0xff]  }
 0x1f1   : > { %4594 = vmatprep.subr.bf16.mxu0 %v6621_v55  ;;  %4635 = vmatprep.subr.bf16.mxu1 %v6624_v56  ;;  %v6688_v54 = vld [vmem:[#allocation8 + $0x528] ss:$12 sps:$4 sm:$0xff]   ;;  %v6693_v55 = vld [vmem:[#allocation8 + $0x3c4] ss:$12 sps:$4 sm:$0xff]  }
 0x1f2   : > { %v6696_v56 = vld [vmem:[#allocation8 + $0x544] ss:$12 sps:$4 sm:$0xff]  }
 0x1f4   : > { %4595 = vmatpush1.bf16.msra.mxu0 %v6619_v59  ;;  %4636 = vmatpush1.bf16.msra.mxu1 %v6622_v60  ;;  %v6699_v59 = vld [vmem:[#allocation8 + $0x3dc] ss:$12 sps:$4 sm:$0xff]  }
 0x1f5   : > { %4596 = vmatprep.subr.bf16.mxu0 %v6627_v61  ;;  %4637 = vmatprep.subr.bf16.mxu1 %v6630_v62  ;;  %v6702_v60 = vld [vmem:[#allocation8 + $0x55c] ss:$12 sps:$4 sm:$0xff]   ;;  %v6697_v61 = vld [vmem:[#allocation8 + $0x3d8] ss:$12 sps:$4 sm:$0xff]  }
 0x1f6   : > { %v6700_v62 = vld [vmem:[#allocation8 + $0x558] ss:$12 sps:$4 sm:$0xff]  }
 0x1f8   : > { %4597 = vmatpush1.bf16.msra.mxu0 %v6625_v1  ;;  %4638 = vmatpush1.bf16.msra.mxu1 %v6628_v2  ;;  %v6703_v1 = vld [vmem:[#allocation8 + $0x3f0] ss:$12 sps:$4 sm:$0xff]  }
 0x1f9   : > { %4598 = vmatprep.subr.bf16.mxu0 %v6633_v3  ;;  %4639 = vmatprep.subr.bf16.mxu1 %v6636_v4  ;;  %v6706_v2 = vld [vmem:[#allocation8 + $0x570] ss:$12 sps:$4 sm:$0xff]   ;;  %v6711_v3 = vld [vmem:[#allocation8 + $0x40c] ss:$12 sps:$4 sm:$0xff]  }
 0x1fa   : > { %v6714_v4 = vld [vmem:[#allocation8 + $0x58c] ss:$12 sps:$4 sm:$0xff]  }
 0x1fc   : > { %4599 = vmatpush1.bf16.msra.mxu0 %v6631_v9  ;;  %4640 = vmatpush1.bf16.msra.mxu1 %v6634_v10  ;;  %v6709_v9 = vld [vmem:[#allocation8 + $0x408] ss:$12 sps:$4 sm:$0xff]  }
 0x1fd   : > { %4600 = vmatprep.subr.bf16.mxu0 %v6639_v11  ;;  %4641 = vmatprep.subr.bf16.mxu1 %v6642_v12  ;;  %v6712_v10 = vld [vmem:[#allocation8 + $0x588] ss:$12 sps:$4 sm:$0xff]   ;;  %v6717_v11 = vld [vmem:[#allocation8 + $0x424] ss:$12 sps:$4 sm:$0xff]  }
 0x1fe   : > { %v6720_v12 = vld [vmem:[#allocation8 + $0x5a4] ss:$12 sps:$4 sm:$0xff]  }
 0x200   : > { %4601 = vmatpush1.bf16.msra.mxu0 %v6637_v16  ;;  %4642 = vmatpush1.bf16.msra.mxu1 %v6640_v17  ;;  %v656_v16 = vsub.s32 5, %v7490_v0  ;;  %v664_v17 = vsub.s32 7, %v7490_v0 }
 0x201   : > { %4652 = vmatprep.subr.bf16.mxu0 %v6645_v18  ;;  %4693 = vmatprep.subr.bf16.mxu1 %v6648_v19  ;;  %v652_v18 = vsub.s32 4, %v7490_v0  ;;  %v660_v19 = vsub.s32 6, %v7490_v0 }
 0x203   : > { %4603 = vmatmul.mubr.bf16.vlgmr.msra.gmra.mrb[12].mxu0 %v7525_v24  ;;  %4644 = vmatmul.mubr.bf16.vlgmr.msra.gmra.mrb[12].mxu1 %v7527_v25 }
 0x204   : > { %4653 = vmatpush1.bf16.msra.mxu0 %v6643_v20  ;;  %4694 = vmatpush1.bf16.msra.mxu1 %v6646_v21  ;;  %v6723_v20 = vld [vmem:[#allocation8 + $0x43c] ss:$12 sps:$4 sm:$0xff]  }
 0x205   : > { %4654 = vmatprep.subr.bf16.mxu0 %v6651_v22  ;;  %4695 = vmatprep.subr.bf16.mxu1 %v6654_v23  ;;  %v6726_v21 = vld [vmem:[#allocation8 + $0x5bc] ss:$12 sps:$4 sm:$0xff]   ;;  %v657_v22 = vrot.slane %v7492_v6, %v656_v16  ;;  %v665_v23 = vrot.slane %v7492_v6, %v664_v17  ;;  %v6765_v17 = vld [vmem:[#allocation8 + $0x664] ss:$12 sps:$4 sm:$0xff]  }
 0x206   : > { %v6760_v16 = vld [vmem:[#allocation8 + $0x7c8] ss:$12 sps:$4 sm:$0xff]  }
 0x208   : > { %4655 = vmatpush1.bf16.msra.mxu0 %v6649_v26  ;;  %4696 = vmatpush1.bf16.msra.mxu1 %v6652_v27  ;;  %v6721_v26 = vld [vmem:[#allocation8 + $0x438] ss:$12 sps:$4 sm:$0xff]  }
 0x209   : > { %4656 = vmatprep.subr.bf16.mxu0 %v6657_v28  ;;  %4697 = vmatprep.subr.bf16.mxu1 %v6660_v29  ;;  %v6724_v27 = vld [vmem:[#allocation8 + $0x5b8] ss:$12 sps:$4 sm:$0xff]   ;;  %v653_v28 = vrot.slane %v7492_v6, %v652_v18  ;;  %v661_v29 = vrot.slane %v7492_v6, %v660_v19  ;;  %v6763_v19 = vld [vmem:[#allocation8 + $0x660] ss:$12 sps:$4 sm:$0xff]  }
 0x20a   : > { %v6768_v18 = vld [vmem:[#allocation8 + $0x7e4] ss:$12 sps:$4 sm:$0xff]  }
 0x20c   : > { %4657 = vmatpush1.bf16.msra.mxu0 %v6655_v5  ;;  %4698 = vmatpush1.bf16.msra.mxu1 %v6658_v30  ;;  %v6729_v5 = vld [vmem:[#allocation8 + $0x454] ss:$12 sps:$4 sm:$0xff]  }
 0x20d   : > { %4658 = vmatprep.subr.bf16.mxu0 %v6663_v48  ;;  %4699 = vmatprep.subr.bf16.mxu1 %v6666_v33  ;;  %v6732_v30 = vld [vmem:[#allocation8 + $0x5d4] ss:$12 sps:$4 sm:$0xff]  }
 0x210   : > { %4659 = vmatpush1.bf16.msra.mxu0 %v6661_v35  ;;  %4700 = vmatpush1.bf16.msra.mxu1 %v6664_v36 }
 0x211   : > { %4660 = vmatprep.subr.bf16.mxu0 %v6669_v37  ;;  %4701 = vmatprep.subr.bf16.mxu1 %v6672_v38 }
 0x214   : > { %4661 = vmatpush1.bf16.msra.mxu0 %v6667_v39  ;;  %4702 = vmatpush1.bf16.msra.mxu1 %v6670_v41 }
 0x215   : > { %4662 = vmatprep.subr.bf16.mxu0 %v6675_v42  ;;  %4703 = vmatprep.subr.bf16.mxu1 %v6678_v43  ;;  %v6727_v42 = vld [vmem:[#allocation8 + $0x450] ss:$12 sps:$4 sm:$0xff]  }
 0x216   : > { %v6730_v43 = vld [vmem:[#allocation8 + $0x5d0] ss:$12 sps:$4 sm:$0xff]  }
 0x218   : > { %4663 = vmatpush1.bf16.msra.mxu0 %v6673_v44  ;;  %4704 = vmatpush1.bf16.msra.mxu1 %v6676_v45 }
 0x219   : > { %4664 = vmatprep.subr.bf16.mxu0 %v6681_v46  ;;  %4705 = vmatprep.subr.bf16.mxu1 %v6684_v47  ;;  %v6735_v47 = vld [vmem:[#allocation8 + $0x46c] ss:$12 sps:$4 sm:$0xff]  }
 0x21c   : > { %4665 = vmatpush1.bf16.msra.mxu0 %v6679_v49  ;;  %4706 = vmatpush1.bf16.msra.mxu1 %v6682_v50  ;;  %v6738_v49 = vld [vmem:[#allocation8 + $0x5ec] ss:$12 sps:$4 sm:$0xff]  }
 0x21d   : > { %4666 = vmatprep.subr.bf16.mxu0 %v6687_v51  ;;  %4707 = vmatprep.subr.bf16.mxu1 %v6690_v52 }
 0x220   : > { %4667 = vmatpush1.bf16.msra.mxu0 %v6685_v53  ;;  %4708 = vmatpush1.bf16.msra.mxu1 %v6688_v54  ;;  %v6733_v54 = vld [vmem:[#allocation8 + $0x468] ss:$12 sps:$4 sm:$0xff]  }
 0x221   : > { %4668 = vmatprep.subr.bf16.mxu0 %v6693_v55  ;;  %4709 = vmatprep.subr.bf16.mxu1 %v6696_v56  ;;  %v6736_v55 = vld [vmem:[#allocation8 + $0x5e8] ss:$12 sps:$4 sm:$0xff]  }
 0x224   : > { %4669 = vmatpush1.bf16.msra.mxu0 %v6691_v57  ;;  %4710 = vmatpush1.bf16.msra.mxu1 %v6694_v58  ;;  %v6741_v58 = vld [vmem:[#allocation8 + $0x604] ss:$12 sps:$4 sm:$0xff]  }
 0x225   : > { %4670 = vmatprep.subr.bf16.mxu0 %v6699_v59  ;;  %4711 = vmatprep.subr.bf16.mxu1 %v6702_v60  ;;  %v6744_v59 = vld [vmem:[#allocation8 + $0x784] ss:$12 sps:$4 sm:$0xff]   ;;  %v6739_v60 = vld [vmem:[#allocation8 + $0x600] ss:$12 sps:$4 sm:$0xff]  }
 0x228   : > { %4671 = vmatpush1.bf16.msra.mxu0 %v6697_v61  ;;  %4712 = vmatpush1.bf16.msra.mxu1 %v6700_v62  ;;  %v6742_v61 = vld [vmem:[#allocation8 + $0x780] ss:$12 sps:$4 sm:$0xff]  }
 0x229   : > { %4672 = vmatprep.subr.bf16.mxu0 %v6705_v40  ;;  %4713 = vmatprep.subr.bf16.mxu1 %v6708_v63  ;;  %v6747_v63 = vld [vmem:[#allocation8 + $0x61c] ss:$12 sps:$4 sm:$0xff]  }
 0x22c   : > { %4673 = vmatpush1.bf16.msra.mxu0 %v6703_v1  ;;  %4714 = vmatpush1.bf16.msra.mxu1 %v6706_v2  ;;  %v6750_v1 = vld [vmem:[#allocation8 + $0x79c] ss:$12 sps:$4 sm:$0xff]   ;;  %v6745_v2 = vld [vmem:[#allocation8 + $0x618] ss:$12 sps:$4 sm:$0xff]  }
 0x22d   : > { %4674 = vmatprep.subr.bf16.mxu0 %v6711_v3  ;;  %4715 = vmatprep.subr.bf16.mxu1 %v6714_v4  ;;  %v6748_v3 = vld [vmem:[#allocation8 + $0x798] ss:$12 sps:$4 sm:$0xff]   ;;  %v6753_v4 = vld [vmem:[#allocation8 + $0x634] ss:$12 sps:$4 sm:$0xff]  }
 0x230   : > { %4675 = vmatpush1.bf16.msra.mxu0 %v6709_v9  ;;  %4716 = vmatpush1.bf16.msra.mxu1 %v6712_v10  ;;  %v6756_v9 = vld [vmem:[#allocation8 + $0x7b4] ss:$12 sps:$4 sm:$0xff]   ;;  %v6751_v10 = vld [vmem:[#allocation8 + $0x630] ss:$12 sps:$4 sm:$0xff]  }
 0x231   : > { %4676 = vmatprep.subr.bf16.mxu0 %v6717_v11  ;;  %4717 = vmatprep.subr.bf16.mxu1 %v6720_v12  ;;  %v6754_v11 = vld [vmem:[#allocation8 + $0x7b0] ss:$12 sps:$4 sm:$0xff]   ;;  %v6759_v12 = vld [vmem:[#allocation8 + $0x64c] ss:$12 sps:$4 sm:$0xff]  }
 0x234   : > { %4677 = vmatpush1.bf16.msra.mxu0 %v6715_v13  ;;  %4718 = vmatpush1.bf16.msra.mxu1 %v6718_v15  ;;  %v6762_v13 = vld [vmem:[#allocation8 + $0x7cc] ss:$12 sps:$4 sm:$0xff]   ;;  %v6757_v15 = vld [vmem:[#allocation8 + $0x648] ss:$12 sps:$4 sm:$0xff]  }
 0x235   : > { %4678 = vmatprep.subr.bf16.mxu0 %v6723_v20  ;;  %4719 = vmatprep.subr.bf16.mxu1 %v6726_v21  ;;  %v6766_v20 = vld [vmem:[#allocation8 + $0x7e0] ss:$12 sps:$4 sm:$0xff]   ;;  %v6771_v21 = vld [vmem:[#allocation8 + $0x67c] ss:$12 sps:$4 sm:$0xff]  }
 0x236   : > { %v2373_v48 = vpop.f32.mrb[4].mxu0  ;;  %v2455_v33 = vpop.f32.mrb[4].mxu1 }
 0x237   : > { %v2375_v35 = vpop.f32.mrb[5].mxu0  ;;  %v2457_v36 = vpop.f32.mrb[5].mxu1  ;;  %v5971_v44 = vadd.f32 %v2373_v48, %v653_v28  ;;  %v5973_v45 = vadd.f32 %v2455_v33, %v661_v29  ;;  %v6780_v28 = vld [vmem:[#allocation8 + $0x814] ss:$12 sps:$4 sm:$0xff]   ;;  %v6775_v29 = vld [vmem:[#allocation8 + $0x690] ss:$12 sps:$4 sm:$0xff]  }
 0x238   : > { %v5972_v37 = vadd.f32 %v2375_v35, %v657_v22  ;;  %v5974_v38 = vadd.f32 %v2457_v36, %v665_v23  ;;  %v2377_v39 = vpop.f32.mrb[6].mxu0  ;;  %v2459_v41 = vpop.f32.mrb[6].mxu1  ;;  %4679 = vmatpush1.bf16.msra.mxu0 %v6721_v26  ;;  %4720 = vmatpush1.bf16.msra.mxu1 %v6724_v27  ;;  %v6774_v22 = vld [vmem:[#allocation8 + $0x7fc] ss:$12 sps:$4 sm:$0xff]   ;;  %v6769_v23 = vld [vmem:[#allocation8 + $0x678] ss:$12 sps:$4 sm:$0xff]  }
 0x239   : > { %v2378_v46 = vpop.f32.mrb[7].mxu0  ;;  %v2460_v6 = vpop.f32.mrb[7].mxu1  ;;  %4680 = vmatprep.subr.bf16.mxu0 %v6729_v5  ;;  %4721 = vmatprep.subr.bf16.mxu1 %v6732_v30  ;;  %v2630_v56 = vmax.f32 %v5971_v44, 0.0  ;;  %v2632_v57 = vmax.f32 %v5973_v45, 0.0  ;;  %v6772_v26 = vld [vmem:[#allocation8 + $0x7f8] ss:$12 sps:$4 sm:$0xff]  }
 0x23a   : > { %v2631_v50 = vmax.f32 %v5972_v37, 0.0  ;;  %v2633_v51 = vmax.f32 %v5974_v38, 0.0  ;;  %v6777_v27 = vld [vmem:[#allocation8 + $0x694] ss:$12 sps:$4 sm:$0xff]   ;;  %v6778_v5 = vld [vmem:[#allocation8 + $0x810] ss:$12 sps:$4 sm:$0xff]  }
 0x23b   : > { %v7545_v62 = vpack.c.bf16 %v2630_v56, %v2630_v56  ;;  %v7547_v40 = vpack.c.bf16 %v2632_v57, %v2632_v57  ;;  %v6783_v30 = vld [vmem:[#allocation8 + $0x6ac] ss:$12 sps:$4 sm:$0xff]   ;;  %v6781_v33 = vld [vmem:[#allocation8 + $0x6a8] ss:$12 sps:$4 sm:$0xff]   ;;  %v6789_v36 = vld [vmem:[#allocation8 + $0x6c4] ss:$12 sps:$4 sm:$0xff]  }
 0x23c   : > { %v7539_v52 = vpack.c.bf16 %v2631_v50, %v2631_v50  ;;  %v7541_v53 = vpack.c.bf16 %v2633_v51, %v2633_v51  ;;  %4681 = vmatpush1.bf16.msra.mxu0 %v6727_v42  ;;  %4722 = vmatpush1.bf16.msra.mxu1 %v6730_v43  ;;  %v6786_v48 = vld [vmem:[#allocation8 + $0x82c] ss:$12 sps:$4 sm:$0xff]   ;;  %v6784_v35 = vld [vmem:[#allocation8 + $0x828] ss:$12 sps:$4 sm:$0xff]   ;;  %v6792_v37 = vld [vmem:[#allocation8 + $0x844] ss:$12 sps:$4 sm:$0xff]  }
 0x23d   : > { %4682 = vmatprep.subr.bf16.mxu0 %v6735_v47  ;;  %4723 = vmatprep.subr.bf16.mxu1 %v6738_v49  ;;  %v6787_v38 = vld [vmem:[#allocation8 + $0x6c0] ss:$12 sps:$4 sm:$0xff]   ;;  %v6795_v41 = vld [vmem:[#allocation8 + $0x6dc] ss:$12 sps:$4 sm:$0xff]   ;;  %v6793_v43 = vld [vmem:[#allocation8 + $0x6d8] ss:$12 sps:$4 sm:$0xff]  }
 0x23e   : > { %4684 = vmatprep.mubr.bf16.mxu0 %v7539_v52  ;;  %4725 = vmatprep.mubr.bf16.mxu1 %v7541_v53  ;;  %v6790_v39 = vld [vmem:[#allocation8 + $0x840] ss:$12 sps:$4 sm:$0xff]   ;;  %v6798_v42 = vld [vmem:[#allocation8 + $0x85c] ss:$12 sps:$4 sm:$0xff]   ;;  %v6796_v44 = vld [vmem:[#allocation8 + $0x858] ss:$12 sps:$4 sm:$0xff]  }
 0x23f   : > { %v6801_v45 = vld [vmem:[#allocation8 + $0x6f4] ss:$12 sps:$4 sm:$0xff]   ;;  %v6799_v6 = vld [vmem:[#allocation8 + $0x6f0] ss:$12 sps:$4 sm:$0xff]   ;;  %v6807_v49 = vld [vmem:[#allocation8 + $0x70c] ss:$12 sps:$4 sm:$0xff]  }
 0x240   : > { %4683 = vmatpush1.bf16.msra.mxu0 %v6733_v54  ;;  %4724 = vmatpush1.bf16.msra.mxu1 %v6736_v55  ;;  %v6804_v46 = vld [vmem:[#allocation8 + $0x874] ss:$12 sps:$4 sm:$0xff]   ;;  %v6802_v47 = vld [vmem:[#allocation8 + $0x870] ss:$12 sps:$4 sm:$0xff]   ;;  %v6810_v50 = vld [vmem:[#allocation8 + $0x88c] ss:$12 sps:$4 sm:$0xff]  }
 0x241   : > { %4734 = vmatprep.subr.bf16.mxu0 %v6741_v58  ;;  %4775 = vmatprep.subr.bf16.mxu1 %v6744_v59  ;;  %v6805_v51 = vld [vmem:[#allocation8 + $0x708] ss:$12 sps:$4 sm:$0xff]   ;;  %v6813_v55 = vld [vmem:[#allocation8 + $0x724] ss:$12 sps:$4 sm:$0xff]   ;;  %v6811_v57 = vld [vmem:[#allocation8 + $0x720] ss:$12 sps:$4 sm:$0xff]  }
 0x242   : > { %v6808_v54 = vld [vmem:[#allocation8 + $0x888] ss:$12 sps:$4 sm:$0xff]   ;;  %v6816_v56 = vld [vmem:[#allocation8 + $0x8a4] ss:$12 sps:$4 sm:$0xff]   ;;  %v6814_v58 = vld [vmem:[#allocation8 + $0x8a0] ss:$12 sps:$4 sm:$0xff]  }
 0x243   : > { %4685 = vmatmul.mubr.bf16.vlgmr.msra.gmra.mrb[16].mxu0 %v7545_v62  ;;  %4726 = vmatmul.mubr.bf16.vlgmr.msra.gmra.mrb[16].mxu1 %v7547_v40  ;;  %v6819_v59 = vld [vmem:[#allocation8 + $0x73c] ss:$12 sps:$4 sm:$0xff]  }
 0x244   : > { %4735 = vmatpush1.bf16.msra.mxu0 %v6739_v60  ;;  %4776 = vmatpush1.bf16.msra.mxu1 %v6742_v61  ;;  %v6822_v60 = vld [vmem:[#allocation8 + $0x8bc] ss:$12 sps:$4 sm:$0xff]   ;;  %v6817_v61 = vld [vmem:[#allocation8 + $0x738] ss:$12 sps:$4 sm:$0xff]  }
 0x245   : > { %4736 = vmatprep.subr.bf16.mxu0 %v6747_v63  ;;  %4777 = vmatprep.subr.bf16.mxu1 %v6750_v1  ;;  %v6820_v63 = vld [vmem:[#allocation8 + $0x8b8] ss:$12 sps:$4 sm:$0xff]   ;;  %v6825_v1 = vld [vmem:[#allocation8 + $0x754] ss:$12 sps:$4 sm:$0xff]  }
 0x248   : > { %4737 = vmatpush1.bf16.msra.mxu0 %v6745_v2  ;;  %4778 = vmatpush1.bf16.msra.mxu1 %v6748_v3  ;;  %v6828_v2 = vld [vmem:[#allocation8 + $0x8d4] ss:$12 sps:$4 sm:$0xff]   ;;  %v6823_v3 = vld [vmem:[#allocation8 + $0x750] ss:$12 sps:$4 sm:$0xff]  }
 0x249   : > { %4738 = vmatprep.subr.bf16.mxu0 %v6753_v4  ;;  %4779 = vmatprep.subr.bf16.mxu1 %v6756_v9  ;;  %v6826_v4 = vld [vmem:[#allocation8 + $0x8d0] ss:$12 sps:$4 sm:$0xff]   ;;  %v6831_v9 = vld [vmem:[#allocation8 + $0x76c] ss:$12 sps:$4 sm:$0xff]  }
 0x24c   : > { %4739 = vmatpush1.bf16.msra.mxu0 %v6751_v10  ;;  %4780 = vmatpush1.bf16.msra.mxu1 %v6754_v11  ;;  %v6834_v10 = vld [vmem:[#allocation8 + $0x8ec] ss:$12 sps:$4 sm:$0xff]   ;;  %v6829_v11 = vld [vmem:[#allocation8 + $0x768] ss:$12 sps:$4 sm:$0xff]  }
 0x24d   : > { %4740 = vmatprep.subr.bf16.mxu0 %v6759_v12  ;;  %4781 = vmatprep.subr.bf16.mxu1 %v6762_v13  ;;  %v6832_v12 = vld [vmem:[#allocation8 + $0x8e8] ss:$12 sps:$4 sm:$0xff]  }
 0x24e   : > { %v6835_v13 = vld [vmem:[#allocation8 + $0xc8] ss:$12 sps:$4 sm:$0xff]  }
 0x250   : > { %4741 = vmatpush1.bf16.msra.mxu0 %v6757_v15  ;;  %4782 = vmatpush1.bf16.msra.mxu1 %v6760_v16  ;;  %v6836_v15 = vld [vmem:[#allocation8 + $0x248] ss:$12 sps:$4 sm:$0xff]   ;;  %v631_v16 = vld [vmem:[#allocation7 + $0x8] sm:$0xf] }
 0x251   : > { %4742 = vmatprep.subr.bf16.mxu0 %v6765_v17  ;;  %4783 = vmatprep.subr.bf16.mxu1 %v6768_v18  ;;  %v669_v17 = vrot.slane %v631_v16, %v7508_v31  ;;  %v677_v18 = vrot.slane %v631_v16, %v7511_v32 }
 0x254   : > { %4743 = vmatpush1.bf16.msra.mxu0 %v6763_v19  ;;  %4784 = vmatpush1.bf16.msra.mxu1 %v6766_v20  ;;  %v673_v19 = vrot.slane %v631_v16, %v7495_v7  ;;  %v681_v20 = vrot.slane %v631_v16, %v648_v8  ;;  %v6837_v8 = vld [vmem:[#allocation8 + $0x8] ss:$12 sps:$4 sm:$0xff]  }
 0x255   : > { %4744 = vmatprep.subr.bf16.mxu0 %v6771_v21  ;;  %4785 = vmatprep.subr.bf16.mxu1 %v6774_v22  ;;  %v6867_v16 = vld [vmem:[#allocation8 + $0x3c8] ss:$12 sps:$4 sm:$0xff]  }
 0x258   : > { %4745 = vmatpush1.bf16.msra.mxu0 %v6769_v23  ;;  %4786 = vmatpush1.bf16.msra.mxu1 %v6772_v26 }
 0x259   : > { %4746 = vmatprep.subr.bf16.mxu0 %v6777_v27  ;;  %4787 = vmatprep.subr.bf16.mxu1 %v6780_v28 }
 0x25c   : > { %4747 = vmatpush1.bf16.msra.mxu0 %v6775_v29  ;;  %4788 = vmatpush1.bf16.msra.mxu1 %v6778_v5 }
 0x25d   : > { %4748 = vmatprep.subr.bf16.mxu0 %v6783_v30  ;;  %4789 = vmatprep.subr.bf16.mxu1 %v6786_v48 }
 0x260   : > { %4749 = vmatpush1.bf16.msra.mxu0 %v6781_v33  ;;  %4790 = vmatpush1.bf16.msra.mxu1 %v6784_v35 }
 0x261   : > { %4750 = vmatprep.subr.bf16.mxu0 %v6789_v36  ;;  %4791 = vmatprep.subr.bf16.mxu1 %v6792_v37 }
 0x264   : > { %4751 = vmatpush1.bf16.msra.mxu0 %v6787_v38  ;;  %4792 = vmatpush1.bf16.msra.mxu1 %v6790_v39 }
 0x265   : > { %4752 = vmatprep.subr.bf16.mxu0 %v6795_v41  ;;  %4793 = vmatprep.subr.bf16.mxu1 %v6798_v42  ;;  %v6838_v42 = vld [vmem:[#allocation8 + $0x188] ss:$12 sps:$4 sm:$0xff]  }
 0x268   : > { %4753 = vmatpush1.bf16.msra.mxu0 %v6793_v43  ;;  %4794 = vmatpush1.bf16.msra.mxu1 %v6796_v44 }
 0x269   : > { %4754 = vmatprep.subr.bf16.mxu0 %v6801_v45  ;;  %4795 = vmatprep.subr.bf16.mxu1 %v6804_v46  ;;  %v6839_v45 = vld [vmem:[#allocation8 + $0xe0] ss:$12 sps:$4 sm:$0xff]  }
 0x26a   : > { %v6840_v46 = vld [vmem:[#allocation8 + $0x260] ss:$12 sps:$4 sm:$0xff]  }
 0x26c   : > { %4755 = vmatpush1.bf16.msra.mxu0 %v6799_v6  ;;  %4796 = vmatpush1.bf16.msra.mxu1 %v6802_v47  ;;  %v6841_v6 = vld [vmem:[#allocation8 + $0x20] ss:$12 sps:$4 sm:$0xff]  }
 0x26d   : > { %4756 = vmatprep.subr.bf16.mxu0 %v6807_v49  ;;  %4797 = vmatprep.subr.bf16.mxu1 %v6810_v50  ;;  %v6842_v47 = vld [vmem:[#allocation8 + $0x1a0] ss:$12 sps:$4 sm:$0xff]   ;;  %v6843_v49 = vld [vmem:[#allocation8 + $0xf8] ss:$12 sps:$4 sm:$0xff]  }
 0x26e   : > { %v6844_v50 = vld [vmem:[#allocation8 + $0x278] ss:$12 sps:$4 sm:$0xff]  }
 0x270   : > { %4757 = vmatpush1.bf16.msra.mxu0 %v6805_v51  ;;  %4798 = vmatpush1.bf16.msra.mxu1 %v6808_v54  ;;  %v6845_v51 = vld [vmem:[#allocation8 + $0x38] ss:$12 sps:$4 sm:$0xff]  }
 0x271   : > { %4758 = vmatprep.subr.bf16.mxu0 %v6813_v55  ;;  %4799 = vmatprep.subr.bf16.mxu1 %v6816_v56  ;;  %v6846_v54 = vld [vmem:[#allocation8 + $0x1b8] ss:$12 sps:$4 sm:$0xff]   ;;  %v6847_v55 = vld [vmem:[#allocation8 + $0x110] ss:$12 sps:$4 sm:$0xff]  }
 0x272   : > { %v6848_v56 = vld [vmem:[#allocation8 + $0x290] ss:$12 sps:$4 sm:$0xff]  }
 0x274   : > { %4759 = vmatpush1.bf16.msra.mxu0 %v6811_v57  ;;  %4800 = vmatpush1.bf16.msra.mxu1 %v6814_v58  ;;  %v6849_v57 = vld [vmem:[#allocation8 + $0x50] ss:$12 sps:$4 sm:$0xff]  }
 0x275   : > { %4760 = vmatprep.subr.bf16.mxu0 %v6819_v59  ;;  %4801 = vmatprep.subr.bf16.mxu1 %v6822_v60  ;;  %v6850_v58 = vld [vmem:[#allocation8 + $0x1d0] ss:$12 sps:$4 sm:$0xff]   ;;  %v6853_v59 = vld [vmem:[#allocation8 + $0x68] ss:$12 sps:$4 sm:$0xff]  }
 0x276   : > { %v6854_v60 = vld [vmem:[#allocation8 + $0x1e8] ss:$12 sps:$4 sm:$0xff]  }
 0x278   : > { %4761 = vmatpush1.bf16.msra.mxu0 %v6817_v61  ;;  %4802 = vmatpush1.bf16.msra.mxu1 %v6820_v63  ;;  %v6855_v61 = vld [vmem:[#allocation8 + $0x140] ss:$12 sps:$4 sm:$0xff]  }
 0x279   : > { %4762 = vmatprep.subr.bf16.mxu0 %v6825_v1  ;;  %4803 = vmatprep.subr.bf16.mxu1 %v6828_v2  ;;  %v6856_v63 = vld [vmem:[#allocation8 + $0x2c0] ss:$12 sps:$4 sm:$0xff]  }
 0x27a   : > { %v6857_v1 = vld [vmem:[#allocation8 + $0x80] ss:$12 sps:$4 sm:$0xff]  }
 0x27b   : > { %v6858_v2 = vld [vmem:[#allocation8 + $0x200] ss:$12 sps:$4 sm:$0xff]  }
 0x27c   : > { %4763 = vmatpush1.bf16.msra.mxu0 %v6823_v3  ;;  %4804 = vmatpush1.bf16.msra.mxu1 %v6826_v4  ;;  %v6859_v3 = vld [vmem:[#allocation8 + $0x158] ss:$12 sps:$4 sm:$0xff]  }
 0x27d   : > { %4764 = vmatprep.subr.bf16.mxu0 %v6831_v9  ;;  %4805 = vmatprep.subr.bf16.mxu1 %v6834_v10  ;;  %v6860_v4 = vld [vmem:[#allocation8 + $0x2d8] ss:$12 sps:$4 sm:$0xff]  }
 0x27e   : > { %v6861_v9 = vld [vmem:[#allocation8 + $0x98] ss:$12 sps:$4 sm:$0xff]  }
 0x27f   : > { %v6862_v10 = vld [vmem:[#allocation8 + $0x218] ss:$12 sps:$4 sm:$0xff]  }
 0x280   : > { %4765 = vmatpush1.bf16.msra.mxu0 %v6829_v11  ;;  %4806 = vmatpush1.bf16.msra.mxu1 %v6832_v12  ;;  %v6863_v11 = vld [vmem:[#allocation8 + $0x170] ss:$12 sps:$4 sm:$0xff]  }
 0x281   : > { %5835 = vmatprep.subr.bf16.mxu0 %v6835_v13  ;;  %5857 = vmatprep.subr.bf16.mxu1 %v6836_v15  ;;  %v6864_v12 = vld [vmem:[#allocation8 + $0x2f0] ss:$12 sps:$4 sm:$0xff]  }
 0x282   : > { %v6865_v13 = vld [vmem:[#allocation8 + $0xb0] ss:$12 sps:$4 sm:$0xff]  }
 0x283   : > { %v6866_v15 = vld [vmem:[#allocation8 + $0x230] ss:$12 sps:$4 sm:$0xff]  }
 0x296   : > { %v2537_v21 = vpop.f32.mrb[8].mxu0  ;;  %v2619_v22 = vpop.f32.mrb[8].mxu1 }
 0x297   : > { %v5975_v23 = vadd.f32 %v2537_v21, %v669_v17  ;;  %v5977_v26 = vadd.f32 %v2619_v22, %v677_v18  ;;  %v2539_v27 = vpop.f32.mrb[9].mxu0  ;;  %v2621_v28 = vpop.f32.mrb[9].mxu1  ;;  %v6868_v17 = vld [vmem:[#allocation8 + $0x548] ss:$12 sps:$4 sm:$0xff]   ;;  %v6872_v21 = vld [vmem:[#allocation8 + $0x560] ss:$12 sps:$4 sm:$0xff]  }
 0x298   : > { %v5976_v29 = vadd.f32 %v2539_v27, %v673_v19  ;;  %v5978_v5 = vadd.f32 %v2621_v28, %v681_v20  ;;  %v2541_v30 = vpop.f32.mrb[10].mxu0  ;;  %v2623_v48 = vpop.f32.mrb[10].mxu1  ;;  %v6869_v18 = vld [vmem:[#allocation8 + $0x308] ss:$12 sps:$4 sm:$0xff]   ;;  %v6871_v20 = vld [vmem:[#allocation8 + $0x3e0] ss:$12 sps:$4 sm:$0xff]  }
 0x299   : > { %v2634_v33 = vmax.f32 %v5975_v23, 0.0  ;;  %v2636_v35 = vmax.f32 %v5977_v26, 0.0  ;;  %v2542_v36 = vpop.f32.mrb[11].mxu0  ;;  %v2624_v37 = vpop.f32.mrb[11].mxu1  ;;  %v6870_v19 = vld [vmem:[#allocation8 + $0x488] ss:$12 sps:$4 sm:$0xff]  }
 0x29a   : > { %v2635_v38 = vmax.f32 %v5976_v29, 0.0  ;;  %v2637_v39 = vmax.f32 %v5978_v5, 0.0  ;;  %v6873_v22 = vld [vmem:[#allocation8 + $0x320] ss:$12 sps:$4 sm:$0xff]   ;;  %v6875_v26 = vld [vmem:[#allocation8 + $0x3f8] ss:$12 sps:$4 sm:$0xff]  }
 0x29b   : > { %v7560_v43 = vpack.c.bf16 %v2634_v33, %v2634_v33  ;;  %v7562_v44 = vpack.c.bf16 %v2636_v35, %v2636_v35  ;;  %v6874_v23 = vld [vmem:[#allocation8 + $0x4a0] ss:$12 sps:$4 sm:$0xff]   ;;  %v6876_v27 = vld [vmem:[#allocation8 + $0x578] ss:$12 sps:$4 sm:$0xff]   ;;  %v6881_v5 = vld [vmem:[#allocation8 + $0x350] ss:$12 sps:$4 sm:$0xff]  }
 0x29c   : > { %v7556_v41 = vpack.c.bf16 %v2635_v38, %v2635_v38  ;;  %v7558_v0 = vpack.c.bf16 %v2637_v39, %v2637_v39  ;;  %v6877_v28 = vld [vmem:[#allocation8 + $0x338] ss:$12 sps:$4 sm:$0xff]   ;;  %v6883_v30 = vld [vmem:[#allocation8 + $0x428] ss:$12 sps:$4 sm:$0xff]   ;;  %v6887_v35 = vld [vmem:[#allocation8 + $0x440] ss:$12 sps:$4 sm:$0xff]  }
 0x29d   : > { %v6878_v29 = vld [vmem:[#allocation8 + $0x4b8] ss:$12 sps:$4 sm:$0xff]   ;;  %v6885_v48 = vld [vmem:[#allocation8 + $0x368] ss:$12 sps:$4 sm:$0xff]   ;;  %v6888_v36 = vld [vmem:[#allocation8 + $0x5c0] ss:$12 sps:$4 sm:$0xff]  }
 0x29e   : > { %4766 = vmatprep.mubr.bf16.mxu0 %v7556_v41  ;;  %4807 = vmatprep.mubr.bf16.mxu1 %v7558_v0  ;;  %v6886_v33 = vld [vmem:[#allocation8 + $0x4e8] ss:$12 sps:$4 sm:$0xff]   ;;  %v6889_v37 = vld [vmem:[#allocation8 + $0x380] ss:$12 sps:$4 sm:$0xff]   ;;  %v6891_v39 = vld [vmem:[#allocation8 + $0x458] ss:$12 sps:$4 sm:$0xff]  }
 0x29f   : > { %4767 = vmatmul.mubr.bf16.vlgmr.msra.gmra.mrb[20].mxu0 %v7560_v43  ;;  %4808 = vmatmul.mubr.bf16.vlgmr.msra.gmra.mrb[20].mxu1 %v7562_v44  ;;  %v6890_v38 = vld [vmem:[#allocation8 + $0x500] ss:$12 sps:$4 sm:$0xff]  }
 0x2a0   : > { %5836 = vmatpush3.bf16.msra.mxu0 %v6837_v8  ;;  %5858 = vmatpush3.bf16.msra.mxu1 %v6838_v42  ;;  %v6892_v8 = vld [vmem:[#allocation8 + $0x5d8] ss:$12 sps:$4 sm:$0xff]  }
 0x2a1   : > { %4848 = vmatprep.mubr.bf16.mxu0 %v7513_v14  ;;  %4888 = vmatprep.mubr.bf16.mxu1 %v7515_v34  ;;  %v6851_v14 = vld [vmem:[#allocation8 + $0x128] ss:$12 sps:$4 sm:$0xff]   ;;  %v6893_v42 = vld [vmem:[#allocation8 + $0x398] ss:$12 sps:$4 sm:$0xff]  }
 0x2a2   : > { %5837 = vmatprep.subr.bf16.mxu0 %v6839_v45  ;;  %5859 = vmatprep.subr.bf16.mxu1 %v6840_v46  ;;  %v6852_v34 = vld [vmem:[#allocation8 + $0x2a8] ss:$12 sps:$4 sm:$0xff]   ;;  %v6894_v45 = vld [vmem:[#allocation8 + $0x518] ss:$12 sps:$4 sm:$0xff]   ;;  %v6895_v46 = vld [vmem:[#allocation8 + $0x470] ss:$12 sps:$4 sm:$0xff]  }
 0x2a4   : > { %5838 = vmatpush3.bf16.msra.mxu0 %v6841_v6  ;;  %5860 = vmatpush3.bf16.msra.mxu1 %v6842_v47 }
 0x2a5   : > { %5839 = vmatprep.subr.bf16.mxu0 %v6843_v49  ;;  %5861 = vmatprep.subr.bf16.mxu1 %v6844_v50  ;;  %v6896_v49 = vld [vmem:[#allocation8 + $0x5f0] ss:$12 sps:$4 sm:$0xff]  }
 0x2a8   : > { %5840 = vmatpush3.bf16.msra.mxu0 %v6845_v51  ;;  %5862 = vmatpush3.bf16.msra.mxu1 %v6846_v54 }
 0x2a9   : > { %5841 = vmatprep.subr.bf16.mxu0 %v6847_v55  ;;  %5863 = vmatprep.subr.bf16.mxu1 %v6848_v56 }
 0x2ac   : > { %5842 = vmatpush3.bf16.msra.mxu0 %v6849_v57  ;;  %5864 = vmatpush3.bf16.msra.mxu1 %v6850_v58  ;;  %v6897_v58 = vld [vmem:[#allocation8 + $0x3b0] ss:$12 sps:$4 sm:$0xff]  }
 0x2ad   : > { %5843 = vmatprep.subr.bf16.mxu0 %v6851_v14  ;;  %5865 = vmatprep.subr.bf16.mxu1 %v6852_v34 }
 0x2b0   : > { %5844 = vmatpush3.bf16.msra.mxu0 %v6853_v59  ;;  %5866 = vmatpush3.bf16.msra.mxu1 %v6854_v60  ;;  %v6898_v59 = vld [vmem:[#allocation8 + $0x530] ss:$12 sps:$4 sm:$0xff]   ;;  %v6899_v60 = vld [vmem:[#allocation8 + $0x6c8] ss:$12 sps:$4 sm:$0xff]  }
 0x2b1   : > { %5845 = vmatprep.subr.bf16.mxu0 %v6855_v61  ;;  %5867 = vmatprep.subr.bf16.mxu1 %v6856_v63  ;;  %v6900_v61 = vld [vmem:[#allocation8 + $0x848] ss:$12 sps:$4 sm:$0xff]  }
 0x2b2   : > { %v6901_v63 = vld [vmem:[#allocation8 + $0x608] ss:$12 sps:$4 sm:$0xff]  }
 0x2b4   : > { %5846 = vmatpush3.bf16.msra.mxu0 %v6857_v1  ;;  %5868 = vmatpush3.bf16.msra.mxu1 %v6858_v2  ;;  %v6902_v1 = vld [vmem:[#allocation8 + $0x788] ss:$12 sps:$4 sm:$0xff]   ;;  %v6903_v2 = vld [vmem:[#allocation8 + $0x6e0] ss:$12 sps:$4 sm:$0xff]  }
 0x2b5   : > { %5847 = vmatprep.subr.bf16.mxu0 %v6859_v3  ;;  %5869 = vmatprep.subr.bf16.mxu1 %v6860_v4  ;;  %v6904_v3 = vld [vmem:[#allocation8 + $0x860] ss:$12 sps:$4 sm:$0xff]  }
 0x2b6   : > { %v6905_v4 = vld [vmem:[#allocation8 + $0x620] ss:$12 sps:$4 sm:$0xff]  }
 0x2b8   : > { %5848 = vmatpush3.bf16.msra.mxu0 %v6861_v9  ;;  %5870 = vmatpush3.bf16.msra.mxu1 %v6862_v10  ;;  %v6906_v9 = vld [vmem:[#allocation8 + $0x7a0] ss:$12 sps:$4 sm:$0xff]   ;;  %v6907_v10 = vld [vmem:[#allocation8 + $0x6f8] ss:$12 sps:$4 sm:$0xff]  }
 0x2b9   : > { %5849 = vmatprep.subr.bf16.mxu0 %v6863_v11  ;;  %5871 = vmatprep.subr.bf16.mxu1 %v6864_v12  ;;  %v6908_v11 = vld [vmem:[#allocation8 + $0x878] ss:$12 sps:$4 sm:$0xff]  }
 0x2ba   : > { %v6909_v12 = vld [vmem:[#allocation8 + $0x638] ss:$12 sps:$4 sm:$0xff]  }
 0x2bc   : > { %5850 = vmatpush3.bf16.msra.mxu0 %v6865_v13  ;;  %5872 = vmatpush3.bf16.msra.mxu1 %v6866_v15  ;;  %v6911_v13 = vld [vmem:[#allocation8 + $0x710] ss:$12 sps:$4 sm:$0xff]  }
 0x2bd   : > { %5879 = vmatprep.subr.bf16.mxu0 %v6867_v16  ;;  %5901 = vmatprep.subr.bf16.mxu1 %v6868_v17  ;;  %v6913_v15 = vld [vmem:[#allocation8 + $0x650] ss:$12 sps:$4 sm:$0xff]   ;;  %v6915_v16 = vld [vmem:[#allocation8 + $0x728] ss:$12 sps:$4 sm:$0xff]  }
 0x2be   : > { %v6916_v17 = vld [vmem:[#allocation8 + $0x8a8] ss:$12 sps:$4 sm:$0xff]  }
 0x2bf   : > { %4849 = vmatmul.mubr.bf16.vlgmr.msra.gmra.mrb[24].mxu0 %v7525_v24  ;;  %4889 = vmatmul.mubr.bf16.vlgmr.msra.gmra.mrb[24].mxu1 %v7527_v25  ;;  %v6879_v24 = vld [vmem:[#allocation8 + $0x410] ss:$12 sps:$4 sm:$0xff]  }
 0x2c0   : > { %5880 = vmatpush3.bf16.msra.mxu0 %v6869_v18  ;;  %4928 = vmatprep.mubr.bf16.mxu0 %v7539_v52  ;;  %v6880_v25 = vld [vmem:[#allocation8 + $0x590] ss:$12 sps:$4 sm:$0xff]   ;;  %v6918_v18 = vld [vmem:[#allocation8 + $0x7e8] ss:$12 sps:$4 sm:$0xff]  }
 0x2c1   : > { %5902 = vmatpush3.bf16.msra.mxu1 %v6870_v19  ;;  %4968 = vmatprep.mubr.bf16.mxu1 %v7541_v53  ;;  %v6882_v52 = vld [vmem:[#allocation8 + $0x4d0] ss:$12 sps:$4 sm:$0xff]   ;;  %v6884_v53 = vld [vmem:[#allocation8 + $0x5a8] ss:$12 sps:$4 sm:$0xff]   ;;  %v6919_v19 = vld [vmem:[#allocation8 + $0x740] ss:$12 sps:$4 sm:$0xff]  }
 0x2c2   : > { %5881 = vmatprep.subr.bf16.mxu0 %v6871_v20  ;;  %5903 = vmatprep.subr.bf16.mxu1 %v6872_v21  ;;  %v6920_v20 = vld [vmem:[#allocation8 + $0x8c0] ss:$12 sps:$4 sm:$0xff]  }
 0x2c3   : > { %v6921_v21 = vld [vmem:[#allocation8 + $0x680] ss:$12 sps:$4 sm:$0xff]  }
 0x2c4   : > { %5882 = vmatpush3.bf16.msra.mxu0 %v6873_v22  ;;  %v6922_v22 = vld [vmem:[#allocation8 + $0x800] ss:$12 sps:$4 sm:$0xff]  }
 0x2c5   : > { %5904 = vmatpush3.bf16.msra.mxu1 %v6874_v23  ;;  %5883 = vmatprep.subr.bf16.mxu0 %v6875_v26  ;;  %v6923_v23 = vld [vmem:[#allocation8 + $0x758] ss:$12 sps:$4 sm:$0xff]  }
 0x2c6   : > { %5905 = vmatprep.subr.bf16.mxu1 %v6876_v27  ;;  %v6924_v26 = vld [vmem:[#allocation8 + $0x8d8] ss:$12 sps:$4 sm:$0xff]  }
 0x2c7   : > { %v6925_v27 = vld [vmem:[#allocation8 + $0x698] ss:$12 sps:$4 sm:$0xff]  }
 0x2c8   : > { %5884 = vmatpush3.bf16.msra.mxu0 %v6877_v28  ;;  %v6926_v28 = vld [vmem:[#allocation8 + $0x818] ss:$12 sps:$4 sm:$0xff]  }
 0x2c9   : > { %5906 = vmatpush3.bf16.msra.mxu1 %v6878_v29  ;;  %5885 = vmatprep.subr.bf16.mxu0 %v6879_v24  ;;  %v6927_v29 = vld [vmem:[#allocation8 + $0x770] ss:$12 sps:$4 sm:$0xff]  }
 0x2ca   : > { %5907 = vmatprep.subr.bf16.mxu1 %v6880_v25  ;;  %v6928_v24 = vld [vmem:[#allocation8 + $0x8f0] ss:$12 sps:$4 sm:$0xff]  }
 0x2cb   : > { %v6929_v25 = vld [vmem:[#allocation8 + $0x6b0] ss:$12 sps:$4 sm:$0xff]  }
 0x2cc   : > { %5886 = vmatpush3.bf16.msra.mxu0 %v6881_v5  ;;  %v6930_v5 = vld [vmem:[#allocation8 + $0x830] ss:$12 sps:$4 sm:$0xff]  }
 0x2cd   : > { %5908 = vmatpush3.bf16.msra.mxu1 %v6882_v52  ;;  %5887 = vmatprep.subr.bf16.mxu0 %v6883_v30 }
 0x2ce   : > { %5909 = vmatprep.subr.bf16.mxu1 %v6884_v53 }
 0x2d0   : > { %5888 = vmatpush3.bf16.msra.mxu0 %v6885_v48 }
 0x2d1   : > { %5910 = vmatpush3.bf16.msra.mxu1 %v6886_v33  ;;  %5889 = vmatprep.subr.bf16.mxu0 %v6887_v35 }
 0x2d2   : > { %5911 = vmatprep.subr.bf16.mxu1 %v6888_v36 }
 0x2d4   : > { %5890 = vmatpush3.bf16.msra.mxu0 %v6889_v37 }
 0x2d5   : > { %5912 = vmatpush3.bf16.msra.mxu1 %v6890_v38  ;;  %5891 = vmatprep.subr.bf16.mxu0 %v6891_v39 }
 0x2d6   : > { %v4604_v6 = vpop.f32.mrb[12].mxu0  ;;  %v4645_v47 = vpop.f32.mrb[12].mxu1  ;;  %5913 = vmatprep.subr.bf16.mxu1 %v6892_v8 }
 0x2d7   : > { %v7574_v50 = vadd.f32 %v4645_v47, %v4604_v6  ;;  %v4606_v51 = vpop.f32.mrb[13].mxu0  ;;  %v4647_v54 = vpop.f32.mrb[13].mxu1 }
 0x2d8   : > { %v7576_v55 = vadd.f32 %v4647_v54, %v4606_v51  ;;  %5892 = vmatpush3.bf16.msra.mxu0 %v6893_v42  ;;  %v4608_v56 = vpop.f32.mrb[14].mxu0  ;;  %v4649_v57 = vpop.f32.mrb[14].mxu1 }
 0x2d9   : > { %5914 = vmatpush3.bf16.msra.mxu1 %v6894_v45  ;;  %v4609_v14 = vpop.f32.mrb[15].mxu0  ;;  %v4650_v34 = vpop.f32.mrb[15].mxu1  ;;  %5893 = vmatprep.subr.bf16.mxu0 %v6895_v46  ;;  %v5082_v45 = vld [vmem:[#allocation10] sm:$0x7] }
 0x2da   : > { %5915 = vmatprep.subr.bf16.mxu1 %v6896_v49 }
 0x2dc   : > { %5894 = vmatpush3.bf16.msra.mxu0 %v6897_v58 }
 0x2dd   : > { %5916 = vmatpush3.bf16.msra.mxu1 %v6898_v59  ;;  %5923 = vmatprep.subr.bf16.mxu0 %v6899_v60 }
 0x2de   : > { %5945 = vmatprep.subr.bf16.mxu1 %v6900_v61 }
 0x2df   : > { %4929 = vmatmul.mubr.bf16.vlgmr.msra.gmra.mrb[28].mxu0 %v7545_v62  ;;  %v6910_v62 = vld [vmem:[#allocation8 + $0x7b8] ss:$12 sps:$4 sm:$0xff]  }
 0x2e0   : > { %4969 = vmatmul.mubr.bf16.vlgmr.msra.gmra.mrb[28].mxu1 %v7547_v40  ;;  %5924 = vmatpush3.bf16.msra.mxu0 %v6901_v63  ;;  %v6912_v40 = vld [vmem:[#allocation8 + $0x890] ss:$12 sps:$4 sm:$0xff]  }
 0x2e1   : > { %5008 = vmatprep.mubr.bf16.mxu0 %v7556_v41  ;;  %5946 = vmatpush3.bf16.msra.mxu1 %v6902_v1  ;;  %v6914_v41 = vld [vmem:[#allocation8 + $0x7d0] ss:$12 sps:$4 sm:$0xff]  }
 0x2e2   : > { %5048 = vmatprep.mubr.bf16.mxu1 %v7558_v0  ;;  %5925 = vmatprep.subr.bf16.mxu0 %v6903_v2  ;;  %v6917_v0 = vld [vmem:[#allocation8 + $0x668] ss:$12 sps:$4 sm:$0xff]  }
 0x2e3   : > { %5947 = vmatprep.subr.bf16.mxu1 %v6904_v3 }
 0x2e4   : > { %5926 = vmatpush3.bf16.msra.mxu0 %v6905_v4 }
 0x2e5   : > { %5948 = vmatpush3.bf16.msra.mxu1 %v6906_v9  ;;  %5927 = vmatprep.subr.bf16.mxu0 %v6907_v10 }
 0x2e6   : > { %5949 = vmatprep.subr.bf16.mxu1 %v6908_v11 }
 0x2e8   : > { %5928 = vmatpush3.bf16.msra.mxu0 %v6909_v12 }
 0x2e9   : > { %5950 = vmatpush3.bf16.msra.mxu1 %v6910_v62  ;;  %5929 = vmatprep.subr.bf16.mxu0 %v6911_v13 }
 0x2ea   : > { %5951 = vmatprep.subr.bf16.mxu1 %v6912_v40 }
 0x2ec   : > { %5930 = vmatpush3.bf16.msra.mxu0 %v6913_v15 }
 0x2ed   : > { %5952 = vmatpush3.bf16.msra.mxu1 %v6914_v41  ;;  %5931 = vmatprep.subr.bf16.mxu0 %v6915_v16 }
 0x2ee   : > { %5953 = vmatprep.subr.bf16.mxu1 %v6916_v17 }
 0x2f0   : > { %5932 = vmatpush3.bf16.msra.mxu0 %v6917_v0 }
 0x2f1   : > { %5954 = vmatpush3.bf16.msra.mxu1 %v6918_v18  ;;  %5933 = vmatprep.subr.bf16.mxu0 %v6919_v19 }
 0x2f2   : > { %5955 = vmatprep.subr.bf16.mxu1 %v6920_v20 }
 0x2f4   : > { %5934 = vmatpush3.bf16.msra.mxu0 %v6921_v21 }
 0x2f5   : > { %5956 = vmatpush3.bf16.msra.mxu1 %v6922_v22  ;;  %5935 = vmatprep.subr.bf16.mxu0 %v6923_v23 }
 0x2f6   : > { %5957 = vmatprep.subr.bf16.mxu1 %v6924_v26 }
 0x2f8   : > { %5936 = vmatpush3.bf16.msra.mxu0 %v6925_v27 }
 0x2f9   : > { %5958 = vmatpush3.bf16.msra.mxu1 %v6926_v28  ;;  %5937 = vmatprep.subr.bf16.mxu0 %v6927_v29 }
 0x2fa   : > { %5959 = vmatprep.subr.bf16.mxu1 %v6928_v24 }
 0x2fc   : > { %5938 = vmatpush3.bf16.msra.mxu0 %v6929_v25  ;;  %v5095_v25 = vrot.slane %v5082_v45, %v7511_v32 }
 0x2fd   : > { %5960 = vmatpush3.bf16.msra.mxu1 %v6930_v5 }
 0x2ff   : > { %5009 = vmatmul.mubr.bf16.vlgmr.msra.gmra.mrb[32].mxu0 %v7560_v43 }
 0x300   : > { %5049 = vmatmul.mubr.bf16.vlgmr.msra.gmra.mrb[32].mxu1 %v7562_v44  ;;  %v5087_v44 = vrot.slane %v5082_v45, %v7508_v31 }
 0x316   : > { %v4686_v52 = vpop.f32.mrb[16].mxu0  ;;  %v4727_v30 = vpop.f32.mrb[16].mxu1 }
 0x317   : > { %v4687_v53 = vadd.f32 %v4686_v52, %v7574_v50  ;;  %v4688_v48 = vpop.f32.mrb[17].mxu0  ;;  %v4729_v33 = vpop.f32.mrb[17].mxu1  ;;  %v5091_v50 = vrot.slane %v5082_v45, %v7495_v7 }
 0x318   : > { %v4689_v35 = vadd.f32 %v4688_v48, %v7576_v55  ;;  %v4690_v36 = vpop.f32.mrb[18].mxu0  ;;  %v4731_v37 = vpop.f32.mrb[18].mxu1 }
 0x319   : > { %v4728_v38 = vadd.f32 %v4727_v30, %v4687_v53  ;;  %v4691_v39 = vpop.f32.mrb[19].mxu0  ;;  %v4732_v8 = vpop.f32.mrb[19].mxu1 }
 0x31a   : > { %v4730_v42 = vadd.f32 %v4729_v33, %v4689_v35 }
 0x372   : > { %v4768_v46 = vpop.f32.mrb[20].mxu0  ;;  %v4809_v43 = vpop.f32.mrb[20].mxu1 }
 0x373   : > { %v4769_v6 = vadd.f32 %v4768_v46, %v4728_v38  ;;  %v4770_v47 = vpop.f32.mrb[21].mxu0  ;;  %v4811_v49 = vpop.f32.mrb[21].mxu1 }
 0x374   : > { %v4771_v51 = vadd.f32 %v4770_v47, %v4730_v42  ;;  %v4772_v54 = vpop.f32.mrb[22].mxu0  ;;  %v4813_v55 = vpop.f32.mrb[22].mxu1 }
 0x375   : > { %v4810_v56 = vadd.f32 %v4809_v43, %v4769_v6  ;;  %v4773_v57 = vpop.f32.mrb[23].mxu0  ;;  %v4814_v58 = vpop.f32.mrb[23].mxu1 }
 0x376   : > { %v4812_v14 = vadd.f32 %v4811_v49, %v4771_v51 }
 0x377   : > { %v5099_v34 = vadd.f32 %v5087_v44, %v4810_v56 }
 0x378   : > { %v5100_v59 = vadd.f32 %v5091_v50, %v4812_v14 }
 0x379   : > { %5102 = vst [vmem:[%s7590_s25] sm:$0xff] %v5099_v34 }
 0x37a   : > { %5103 = vst [vmem:[%s7590_s25 + $0x8] sm:$0xff] %v5100_v59 }
 0x392   : > { %v5851_v31 = vpop.f32.mrb[24].mxu0  ;;  %v5873_v60 = vpop.f32.mrb[24].mxu1 }
 0x393   : > { %v5852_v61 = vpop.f32.mrb[25].mxu0  ;;  %v5874_v7 = vpop.f32.mrb[25].mxu1 }
 0x394   : > { %v5853_v63 = vadd.f32 %v5852_v61, %v5851_v31  ;;  %v5875_v1 = vadd.f32 %v5874_v7, %v5873_v60  ;;  %v5854_v2 = vpop.f32.mrb[26].mxu0  ;;  %v5876_v3 = vpop.f32.mrb[26].mxu1 }
 0x395   : > { %v5855_v4 = vpop.f32.mrb[27].mxu0  ;;  %v5877_v9 = vpop.f32.mrb[27].mxu1 }
 0x396   : > { %v4891_v10 = vadd.f32 %v5875_v1, %v5853_v63 }
 0x3b2   : > { %v5895_v11 = vpop.f32.mrb[28].mxu0 }
 0x3b3   : > { %v5917_v12 = vpop.f32.mrb[28].mxu1  ;;  %v5896_v62 = vpop.f32.mrb[29].mxu0 }
 0x3b4   : > { %v5897_v13 = vadd.f32 %v5896_v62, %v5895_v11  ;;  %v5918_v40 = vpop.f32.mrb[29].mxu1  ;;  %v5898_v15 = vpop.f32.mrb[30].mxu0 }
 0x3b5   : > { %v5919_v41 = vadd.f32 %v5918_v40, %v5917_v12  ;;  %v5920_v16 = vpop.f32.mrb[30].mxu1  ;;  %v5899_v17 = vpop.f32.mrb[31].mxu0 }
 0x3b6   : > { %v4931_v0 = vadd.f32 %v5897_v13, %v4891_v10  ;;  %v5921_v18 = vpop.f32.mrb[31].mxu1 }
 0x3b8   : > { %v4971_v19 = vadd.f32 %v5919_v41, %v4931_v0 }
 0x3d2   : > { %v5939_v20 = vpop.f32.mrb[32].mxu0 }
 0x3d3   : > { %v5961_v21 = vpop.f32.mrb[32].mxu1  ;;  %v5940_v22 = vpop.f32.mrb[33].mxu0 }
 0x3d4   : > { %v5941_v23 = vadd.f32 %v5940_v22, %v5939_v20  ;;  %v5962_v26 = vpop.f32.mrb[33].mxu1  ;;  %v5942_v27 = vpop.f32.mrb[34].mxu0 }
 0x3d5   : > { %v5963_v28 = vadd.f32 %v5962_v26, %v5961_v21  ;;  %v5964_v29 = vpop.f32.mrb[34].mxu1  ;;  %v5943_v24 = vpop.f32.mrb[35].mxu0 }
 0x3d6   : > { %v5011_v5 = vadd.f32 %v5941_v23, %v4971_v19  ;;  %v5965_v52 = vpop.f32.mrb[35].mxu1 }
 0x3d8   : > { %v5051_v30 = vadd.f32 %v5963_v28, %v5011_v5 }
 0x3da   : > { %v5101_v53 = vadd.f32 %v5095_v25, %v5051_v30 }
 0x3dc   : > { %5104 = vst [vmem:[%s7590_s25 + $0x10] sm:$0xff] %v5101_v53 }
 0x3dd   : > { %7086 = shalt.err (!%p7083_p8)
}
 0x3de   : > { %s7087_s15 = scalar_lea.hbm %s7600_s12, 384  ;;  %s7091_s9 = scalar_lea.hbm %s7655_s5, 768 }
 0x3df   : > { %p7088_p12 = scmp.ne.s32.totalorder %s7600_s12, %s7087_s15  ;;  %p7092_p3 = scmp.lt.u32.totalorder %s7600_s12, %s7655_s5 }
 0x3e0   : > { %p7093_p13 = scmp.lt.u32.totalorder %s7091_s9, %s7087_s15  ;;  %p7095_p2 = scmp.lt.u32.totalorder %s7087_s15, %s7600_s12 }
 0x3e1   : > { %p7089_p1 = pnand %p7088_p12, %p7674_p9 }
 0x3e2   : > { %p7094_p4 = por %p7093_p13, %p7092_p3 }
 0x3e3   : > { %p7090_p6 = pneg %p7089_p1 }
 0x3e4   : > { %p7096_p10 = por %p7095_p2, %p7094_p4 }
 0x3e6   : > { %p7097_p11 = pnand %p7096_p10, %p7090_p6 }
 0x3e8   : > { %7100 = shalt.err (!%p7097_p11)
}
 0x3e9   : > { %6025 = dma.vmem_to_hbm [thread:$0]  (%p7674_p9), %s7602_s30, 384, %s7600_s12, %s5106_s29  }
 0x3ea PF: > { %s5132_s25 = sand.u32 1, %s7143_s18   ;;  %p7675_p0 = scmp.ne.s32.totalorder %s7670_s11, 0 }
 0x3eb   : > { %p7676_p7 = scmp.ge.s32.totalorder %s7163_s23, 2  ;;  %s5133_s26 = scalar_lea.sflag [#allocation4], %s5132_s25 }
 0x3ed   : > { %p6045_p5 = pnand %p7676_p7, %p7675_p0 }
 0x3ef   : > { %7138 = dma.done.wait (!%p6045_p5), %s5133_s26, 384  }
 0x3f0   : > { %7140 = vsyncadd (!%p6045_p5), %s5133_s26, 4294966912  ;;  %s23_s23 = sadd.s32 1, %s7163_s23   ;;  %s7677_s18 = smov %s7147_s19 }
 0x3f1   : > { %p20_p8 = scmp.ge.s32.totalorder %s23_s23, 4   ;;  %s7678_s19 = smov %s7151_s20 }
 0x3f2   : > { %s7679_s20 = smov %s7387_s10  ;;  %s7680_s21 = smov %s7159_s22 }
 0x3f3   : > { %s7681_s22 = smov %s7683_s16  ;;  %22 = sbr.rel (!%p20_p8) target bundleno = 10 (0xa), region = 116 }
 0x3fa   :  { %5138 = vsyncpa [#allocation3], 1 }
 0x3fb   :  { %5140 = vsyncpa [#allocation3 + $0x1], 1 }
 0x3fc   :  { %5141 = vsyncpa [#allocation6], 1 }
 0x3fd   :  { %5142 = vsyncpa [#allocation9], 1 }
 0x3fe   :  { %5143 = vsyncpa [#allocation4], 1 }
 0x3ff   :  { %5145 = vsyncpa [#allocation4 + $0x1], 1 }

</bundles_post_ra>
